<compile_context>
chip_gen: v5e
topology: v5e:2x2
jax: 0.10.0
libtpu: 0.0.40
codegen_flags: <defaults>
</compile_context>

<pallas_src>
import functools
import math

import jax
import jax.numpy as jnp
from jax import lax
from jax.experimental import pallas as pl
from jax.experimental.pallas import tpu as pltpu


_VMEM_LIMIT = 48 * 1024 * 1024      # fits v7x (64 MiB physical); ample on v5e/v6e
_INV_SQRT2 = 0.7071067811865476


def _round_up(x, m):
    return ((x + m - 1) // m) * m


# --------------------------------------------------------------------------
# In-kernel math helpers
# --------------------------------------------------------------------------

def _erf(x):
    # Abramowitz & Stegun 7.1.26 polynomial (|err| < 1.5e-7 ~ f32 round-off),
    # built only from exp / div / select so it always lowers in Mosaic; this is
    # the exact (erf-based) GELU that torch.nn.functional.gelu uses by default.
    ax = jnp.abs(x)
    t = 1.0 / (1.0 + 0.3275911 * ax)
    poly = t * (0.254829592 + t * (-0.284496736 + t * (1.421413741
               + t * (-1.453152027 + t * 1.061405429))))
    e = 1.0 - poly * jnp.exp(-ax * ax)
    return jnp.where(x >= 0, e, -e)


def _gelu(x):
    return 0.5 * x * (1.0 + _erf(x * _INV_SQRT2))


# --------------------------------------------------------------------------
# Pallas kernels
# --------------------------------------------------------------------------

def _linear_kernel(x_ref, w_ref, b_ref, *rest, apply_gelu=False):
    """Lane-dense pointwise linear: o = [gelu](W @ x + b [+ residual]).

    x_ref : (Ci, tile_n)   — big N dimension on the 128-lane axis
    w_ref : (Co, Ci), b_ref : (Co, 1)
    rest  : ([r_ref (Co, tile_n)], o_ref (Co, tile_n))
    Dots run on the MXU in bf16 (its native fast mode); epilogue stays f32.
    """
    if len(rest) == 2:
        r_ref, o_ref = rest
    else:
        r_ref = None
        (o_ref,) = rest
    y = jnp.dot(w_ref[...].astype(jnp.bfloat16),
                x_ref[...].astype(jnp.bfloat16),
                preferred_element_type=jnp.float32)
    y = y + b_ref[...]
    if r_ref is not None:
        y = y + r_ref[...].astype(jnp.float32)
    if apply_gelu:
        y = _gelu(y)
    o_ref[...] = y.astype(o_ref.dtype)


def _head_kernel(x_ref, r_ref, wl_ref, bl_ref, *rest, has_fc1):
    """Fused network tail for one N-tile (nothing but x/res read, out written):

        t = W_last @ x + b_last + residual      (last FNO block, no activation)
        t = gelu(W_fc1 @ t + b_fc1)             (if fc_dim > 0)
        o = W_fc2 @ t + b_fc2

    All intermediates live in VMEM/vregs; dots in bf16, epilogues in f32.
    """
    if has_fc1:
        w1_ref, b1_ref, w2_ref, b2_ref, o_ref = rest
    else:
        w2_ref, b2_ref, o_ref = rest

    x = x_ref[...].astype(jnp.bfloat16)
    t = jnp.dot(wl_ref[...].astype(jnp.bfloat16), x,
                preferred_element_type=jnp.float32)
    t = t + bl_ref[...] + r_ref[...].astype(jnp.float32)
    if has_fc1:
        t = jnp.dot(w1_ref[...].astype(jnp.bfloat16), t.astype(jnp.bfloat16),
                    preferred_element_type=jnp.float32) + b1_ref[...]
        t = _gelu(t)
    y = jnp.dot(w2_ref[...].astype(jnp.bfloat16), t.astype(jnp.bfloat16),
                preferred_element_type=jnp.float32) + b2_ref[...]
    o_ref[...] = y.astype(o_ref.dtype)


def _spectral_mix_kernel(xr_ref, xi_ref, wr_ref, wi_ref, or_ref, oi_ref):
    """Per-frequency complex channel mix for one (freq-block, batch) grid cell.

    xr/xi : (Ci, fb)      f32  Fourier coefficients (batch dim squeezed)
    wr/wi : (Ci, Co, fb)  bf16 spectral weights; the weight block index is
                               invariant across the inner batch grid axis so
                               it stays VMEM-resident instead of re-DMAing.
    or/oi : (Co, fb)      f32  out[o,f] = sum_i x[i,f] * w[i,o,f]   (complex)
    """
    ci = xr_ref.shape[0]
    xr_all = xr_ref[...]
    xi_all = xi_ref[...]
    acc_r = jnp.zeros(or_ref.shape, jnp.float32)
    acc_i = jnp.zeros(oi_ref.shape, jnp.float32)
    # Static unroll over Ci: the loop-carried accumulators are now only
    # 2*(Co/8)*(fb/128) vregs (no (Co,B,fb) spill), and static indices keep
    # every slice / weight load trivially lowerable.
    for i in range(ci):
        xr = xr_all[i:i + 1, :]                       # (1, fb) row, broadcast
        xi = xi_all[i:i + 1, :]
        wr = wr_ref[i].astype(jnp.float32)            # (Co, fb)
        wi = wi_ref[i].astype(jnp.float32)
        acc_r = acc_r + (wr * xr - wi * xi)
        acc_i = acc_i + (wr * xi + wi * xr)
    or_ref[...] = acc_r
    oi_ref[...] = acc_i


# --------------------------------------------------------------------------
# Pallas wrappers
# --------------------------------------------------------------------------

def _pick_tile_n(n, max_tile_n=8192):
    """128-aligned lane tile; >=2 blocks whenever possible (v7x has 2 TCs)."""
    if n >= 2 * max_tile_n:
        return max_tile_n
    if n >= 256 and n % 256 == 0:
        return n // 2
    if n > max_tile_n:
        return max_tile_n
    return n


def _pick_fb(f_pad, ci, co):
    """Frequency block: keep the two (Co, fb) f32 accumulators within ~32 vregs
    and each streamed (Ci, Co, fb) bf16 weight block within ~2 MiB."""
    cap_acc = max(16 // max(co // 8, 1), 1) * 128
    cap_w = max((2 * 1024 * 1024) // (max(ci * co, 1) * 2) // 128, 1) * 128
    cap = min(f_pad, cap_acc, cap_w, 1024)
    fb = 128
    while fb * 2 <= cap and f_pad % (fb * 2) == 0:
        fb *= 2
    return fb


def pointwise_linear_t(x_t, w, b, residual=None, apply_gelu=False,
                       max_tile_n=8192):
    """x_t: (Cin, N), w: (Cout, Cin), b: (Cout,), residual: (Cout, N) or None."""
    ci, n = x_t.shape
    co = w.shape[0]
    tile_n = _pick_tile_n(n, max_tile_n)
    grid = (pl.cdiv(n, tile_n),)
    b2 = b.reshape(co, 1)

    x_spec = pl.BlockSpec((ci, tile_n), lambda i: (0, i))
    w_spec = pl.BlockSpec((co, ci), lambda i: (0, 0))
    b_spec = pl.BlockSpec((co, 1), lambda i: (0, 0))
    o_spec = pl.BlockSpec((co, tile_n), lambda i: (0, i))
    out_shape = jax.ShapeDtypeStruct((co, n), jnp.float32)
    params = pltpu.CompilerParams(dimension_semantics=("parallel",),
                                  vmem_limit_bytes=_VMEM_LIMIT)
    kern = functools.partial(_linear_kernel, apply_gelu=apply_gelu)

    if residual is None:
        return pl.pallas_call(
            kern, grid=grid,
            in_specs=[x_spec, w_spec, b_spec],
            out_specs=o_spec, out_shape=out_shape,
            compiler_params=params,
        )(x_t, w, b2)

    r_spec = pl.BlockSpec((co, tile_n), lambda i: (0, i))
    return pl.pallas_call(
        kern, grid=grid,
        in_specs=[x_spec, w_spec, b_spec, r_spec],
        out_specs=o_spec, out_shape=out_shape,
        input_output_aliases={3: 0},     # write the output over the residual
        compiler_params=params,
    )(x_t, w, b2, residual)


def fused_head(h, residual, wl, bl, w2, b2, w1=None, b1=None, max_tile_n=8192):
    """Last FNO block (1x1 conv + spectral residual) + fc1(+GELU) + fc2, fused."""
    ci, n = h.shape
    cm = wl.shape[0]
    co = w2.shape[0]
    has_fc1 = w1 is not None
    tile_n = _pick_tile_n(n, max_tile_n)
    grid = (pl.cdiv(n, tile_n),)

    specs = [pl.BlockSpec((ci, tile_n), lambda i: (0, i)),
             pl.BlockSpec((cm, tile_n), lambda i: (0, i)),
             pl.BlockSpec((cm, ci), lambda i: (0, 0)),
             pl.BlockSpec((cm, 1), lambda i: (0, 0))]
    args = [h, residual, wl, bl.reshape(cm, 1)]
    if has_fc1:
        fd = w1.shape[0]
        specs += [pl.BlockSpec((fd, cm), lambda i: (0, 0)),
                  pl.BlockSpec((fd, 1), lambda i: (0, 0))]
        args += [w1, b1.reshape(fd, 1)]
    fk = w2.shape[1]
    specs += [pl.BlockSpec((co, fk), lambda i: (0, 0)),
              pl.BlockSpec((co, 1), lambda i: (0, 0))]
    args += [w2, b2.reshape(co, 1)]

    return pl.pallas_call(
        functools.partial(_head_kernel, has_fc1=has_fc1),
        grid=grid, in_specs=specs,
        out_specs=pl.BlockSpec((co, tile_n), lambda i: (0, i)),
        out_shape=jax.ShapeDtypeStruct((co, n), jnp.float32),
        compiler_params=pltpu.CompilerParams(dimension_semantics=("parallel",),
                                             vmem_limit_bytes=_VMEM_LIMIT),
    )(*args)


def spectral_conv3d(h, wr, wi, *, B, X, Y, T, m1, m2, m3):
    """SpectralConv3d: truncated rFFT -> Pallas per-mode channel mix -> irFFT.

    h      : (Ci, N) real, N = B*X*Y*T (channels-first flattened layout)
    wr/wi  : (Ci, Co, F_pad) real/imag spectral weights over the four retained
             corner mode blocks, lane-padded, bf16 storage.
    returns: (Co, N) real (f32)
    """
    ci = h.shape[0]
    co = wr.shape[1]
    f_pad = wr.shape[2]
    f = 4 * m1 * m2 * m3
    tf = T // 2 + 1
    assert X >= 2 * m1 and Y >= 2 * m2 and tf >= m3, "modes exceed grid size"

    x5 = h.reshape(ci, B, X, Y, T)
    # TODO(synk): the (r)FFTs have no Pallas/Mosaic primitive and stay in
    # jnp.fft; they are truncated so only the consumed modes are transformed.
    xt = jnp.fft.rfft(x5, axis=4)[..., :m3]                     # (Ci,B,X,Y,m3)
    xt = jnp.fft.fft(xt, axis=2)
    xt = jnp.concatenate([xt[:, :, :m1], xt[:, :, X - m1:]], axis=2)
    xt = jnp.fft.fft(xt, axis=3)                                # (Ci,B,2m1,Y,m3)
    xt = jnp.concatenate([xt[:, :, :, :m2], xt[:, :, :, Y - m2:]], axis=3)
    xin = xt.reshape(ci, B, f)                                  # (Ci,B,F)

    xr = jnp.real(xin)
    xi = jnp.imag(xin)
    if f_pad > f:                                               # lane-align F
        pad = ((0, 0), (0, 0), (0, f_pad - f))
        xr = jnp.pad(xr, pad)
        xi = jnp.pad(xi, pad)
    # (B, Ci, F_pad): Ci/F sit on the (sublane, lane) axes, B on an untiled
    # leading dim so it can be squeezed out of the kernel blocks.
    xr = jnp.transpose(xr, (1, 0, 2))
    xi = jnp.transpose(xi, (1, 0, 2))

    fb = _pick_fb(f_pad, ci, co)
    nf = f_pad // fb
    grid = (nf, B)          # batch innermost -> weight block stays VMEM-resident
    x_spec = pl.BlockSpec((None, ci, fb), lambda fi, b: (b, 0, fi))
    w_spec = pl.BlockSpec((ci, co, fb), lambda fi, b: (0, 0, fi))
    o_spec = pl.BlockSpec((None, co, fb), lambda fi, b: (b, 0, fi))

    out_r, out_i = pl.pallas_call(
        _spectral_mix_kernel, grid=grid,
        in_specs=[x_spec, x_spec, w_spec, w_spec],
        out_specs=(o_spec, o_spec),
        out_shape=(jax.ShapeDtypeStruct((B, co, f_pad), jnp.float32),
                   jax.ShapeDtypeStruct((B, co, f_pad), jnp.float32)),
        compiler_params=pltpu.CompilerParams(
            dimension_semantics=("parallel", "parallel"),
            vmem_limit_bytes=_VMEM_LIMIT),
    )(xr, xi, wr, wi)

    out_c = lax.complex(out_r[..., :f], out_i[..., :f])         # (B,Co,F) c64
    out_c = jnp.transpose(out_c, (1, 0, 2)).reshape(co, B, 2 * m1, 2 * m2, m3)

    # Inverse: expand X while Y is still compact, ifft X, expand Y, ifft Y,
    # then zero-pad the T half-spectrum and irfft T (mirrors the truncation).
    zx = jnp.zeros((co, B, X - 2 * m1, 2 * m2, m3), jnp.complex64)
    o = jnp.concatenate([out_c[:, :, :m1], zx, out_c[:, :, m1:]], axis=2)
    o = jnp.fft.ifft(o, axis=2)
    zy = jnp.zeros((co, B, X, Y - 2 * m2, m3), jnp.complex64)
    o = jnp.concatenate([o[:, :, :, :m2], zy, o[:, :, :, m2:]], axis=3)
    o = jnp.fft.ifft(o, axis=3)
    o = jnp.pad(o, ((0, 0), (0, 0), (0, 0), (0, 0), (0, tf - m3)))
    y = jnp.fft.irfft(o, n=T, axis=4)                           # (Co,B,X,Y,T)
    return y.reshape(co, B * X * Y * T).astype(jnp.float32)


# --------------------------------------------------------------------------
# FNN3d forward
# --------------------------------------------------------------------------

def fnn3d_forward(params, x, *, modes1, modes2, modes3, layers, fc_dim,
                  pad_ratio=0.0):
    B, X, Y, T, in_dim = x.shape
    N = B * X * Y * T
    # TODO(synk): pad_ratio > 0 domain padding not implemented (module default 0).
    assert pad_ratio == 0.0

    # channels-first flattened layout (C, N): the big N sits on the lane axis.
    h = jnp.transpose(x.reshape(N, in_dim))                        # (in_dim, N)
    h = pointwise_linear_t(h, params["fc0_w"], params["fc0_b"])    # (C0, N) f32

    length = len(layers) - 1
    for i in range(length - 1):
        x1 = spectral_conv3d(h, params["sp_wr"][i], params["sp_wi"][i],
                             B=B, X=X, Y=Y, T=T,
                             m1=modes1[i], m2=modes2[i], m3=modes3[i])
        # 1x1-conv branch fused with the spectral residual add + GELU.
        h = pointwise_linear_t(h, params["w_w"][i], params["w_b"][i],
                               residual=x1, apply_gelu=True)

    # Last FNO block (no activation) fused with fc1 + GELU + fc2 in one kernel.
    i = length - 1
    x1 = spectral_conv3d(h, params["sp_wr"][i], params["sp_wi"][i],
                         B=B, X=X, Y=Y, T=T,
                         m1=modes1[i], m2=modes2[i], m3=modes3[i])
    if fc_dim > 0:
        out = fused_head(h, x1, params["w_w"][i], params["w_b"][i],
                         params["fc2_w"], params["fc2_b"],
                         w1=params["fc1_w"], b1=params["fc1_b"])
    else:
        out = fused_head(h, x1, params["w_w"][i], params["w_b"][i],
                         params["fc2_w"], params["fc2_b"])

    out_dim = out.shape[0]
    out = out.reshape(out_dim, B, X, Y, T)
    return jnp.transpose(out, (1, 2, 3, 4, 0))


# --------------------------------------------------------------------------
# Deterministic parameter initialization (matches the PyTorch module)
# --------------------------------------------------------------------------

def init_params(key, in_dim, layers, modes1, modes2, modes3, fc_dim, out_dim,
                spectral_dtype=jnp.bfloat16):
    keys = iter(jax.random.split(key, 128))
    p = {}

    def lin(fan_in, fan_out):
        bound = 1.0 / math.sqrt(fan_in)
        w = jax.random.uniform(next(keys), (fan_out, fan_in), jnp.float32,
                               -bound, bound)
        b = jax.random.uniform(next(keys), (fan_out,), jnp.float32,
                               -bound, bound)
        return w, b

    p["fc0_w"], p["fc0_b"] = lin(in_dim, layers[0])

    p["sp_wr"], p["sp_wi"], p["w_w"], p["w_b"] = [], [], [], []
    for i in range(len(layers) - 1):
        ci, co = layers[i], layers[i + 1]
        m1, m2, m3 = modes1[i], modes2[i], modes3[i]
        scale = 1.0 / (ci * co)
        shape = (ci, co, 2 * m1, 2 * m2, m3)     # the 4 retained mode corners
        wr4 = scale * jax.random.uniform(next(keys), shape, jnp.float32)
        wi4 = scale * jax.random.uniform(next(keys), shape, jnp.float32)
        f = 4 * m1 * m2 * m3
        f_pad = _round_up(f, 128)

        def flat(w):
            w = w.reshape(ci, co, f)
            w = jnp.pad(w, ((0, 0), (0, 0), (0, f_pad - f)))
            # bf16 storage halves spectral-weight HBM traffic; the kernel
            # accumulates in f32 from raw Re/Im (no pre-combined rounding).
            return w.astype(spectral_dtype)

        p["sp_wr"].append(flat(wr4))
        p["sp_wi"].append(flat(wi4))
        ww, wb = lin(ci, co)
        p["w_w"].append(ww)
        p["w_b"].append(wb)

    if fc_dim > 0:
        p["fc1_w"], p["fc1_b"] = lin(layers[-1], fc_dim)
        p["fc2_w"], p["fc2_b"] = lin(fc_dim, out_dim)
    else:
        p["fc2_w"], p["fc2_b"] = lin(layers[-1], out_dim)
    return p


# --------------------------------------------------------------------------

if __name__ == "__main__":
    B, X, Y, T = 2, 8, 8, 8
    in_dim, out_dim = 4, 1
    width = 8
    layers = [width] * 4
    modes1 = [4, 4, 4]
    modes2 = [4, 4, 4]
    modes3 = [3, 3, 3]
    fc_dim = 16

    key = jax.random.PRNGKey(0)
    kp, kx = jax.random.split(key)
    params = init_params(kp, in_dim, layers, modes1, modes2, modes3, fc_dim,
                         out_dim)
    x = jax.random.normal(kx, (B, X, Y, T, in_dim), jnp.float32)

    fwd = jax.jit(functools.partial(
        fnn3d_forward, modes1=modes1, modes2=modes2, modes3=modes3,
        layers=layers, fc_dim=fc_dim, pad_ratio=0.0))

    out = fwd(params, x)
    jax.block_until_ready(out)
    assert out.shape == (B, X, Y, T, out_dim), out.shape
    assert bool(jnp.all(jnp.isfinite(out)))
    print("KERNEL_OK")
</pallas_src>

<mosaic_0001>
module attributes {stable_mosaic.version = 11 : i64} {
  func.func @_linear_kernel(%arg0: i32, %arg1: memref<4x512xf32, #tpu.memory_space<vmem>>, %arg2: memref<8x4xf32, #tpu.memory_space<vmem>>, %arg3: memref<8x1xf32, #tpu.memory_space<vmem>>, %arg4: memref<8x512xf32, #tpu.memory_space<vmem>>) attributes {dimension_semantics = [#tpu.dimension_semantics<parallel>], iteration_bounds = array<i64: 2>, scalar_prefetch = 0 : i64, scratch_operands = 0 : i64, tpu.core_type = #tpu.core_type<tc>, window_params = [{transform_indices = @transform_0, window_bounds = array<i64: 4, 512>}, {pipeline_mode = #tpu.pipeline_mode<synchronous>, transform_indices = @transform_1, window_bounds = array<i64: 8, 4>}, {pipeline_mode = #tpu.pipeline_mode<synchronous>, transform_indices = @transform_2, window_bounds = array<i64: 8, 1>}, {transform_indices = @transform_3, window_bounds = array<i64: 8, 512>}]} {
    %c0 = arith.constant 0 : index
    %c0_0 = arith.constant 0 : index
    %0 = vector.load %arg2[%c0, %c0_0] : memref<8x4xf32, #tpu.memory_space<vmem>>, vector<8x4xf32>
    %1 = arith.truncf %0 : vector<8x4xf32> to vector<8x4xbf16>
    %c0_1 = arith.constant 0 : index
    %c0_2 = arith.constant 0 : index
    %2 = vector.load %arg1[%c0_1, %c0_2] : memref<4x512xf32, #tpu.memory_space<vmem>>, vector<4x512xf32>
    %3 = arith.truncf %2 : vector<4x512xf32> to vector<4x512xbf16>
    %cst = arith.constant dense<0.000000e+00> : vector<8x512xf32>
    %4 = tpu.matmul %1, %3, %cst {dimension_numbers = #tpu.dot_dimension_numbers<[1], [0], [0], [1], [0, 0, 1, 1], [], []>} : vector<8x4xbf16>, vector<4x512xbf16>, vector<8x512xf32> -> vector<8x512xf32>
    %c0_3 = arith.constant 0 : index
    %c0_4 = arith.constant 0 : index
    %5 = vector.load %arg3[%c0_3, %c0_4] : memref<8x1xf32, #tpu.memory_space<vmem>>, vector<8x1xf32>
    %6 = vector.broadcast %5 : vector<8x1xf32> to vector<8x512xf32>
    %7 = arith.addf %4, %6 : vector<8x512xf32>
    %c0_5 = arith.constant 0 : index
    %c0_6 = arith.constant 0 : index
    %8 = vector.load %arg4[%c0_5, %c0_6] : memref<8x512xf32, #tpu.memory_space<vmem>>, vector<8x512xf32>
    tpu.vector_store %arg4[%c0_5, %c0_6], %7 {strides = array<i32>} : memref<8x512xf32, #tpu.memory_space<vmem>>, vector<8x512xf32>,
    return
  }
  func.func @transform_0(%arg0: i32) -> (i32, i32) {
    %c0_i32 = arith.constant 0 : i32
    %c0_i32_0 = arith.constant 0 : i32
    return %c0_i32, %arg0 : i32, i32
  }
  func.func @transform_1(%arg0: i32) -> (i32, i32) {
    %c0_i32 = arith.constant 0 : i32
    %c0_i32_0 = arith.constant 0 : i32
    %c0_i32_1 = arith.constant 0 : i32
    return %c0_i32, %c0_i32_0 : i32, i32
  }
  func.func @transform_2(%arg0: i32) -> (i32, i32) {
    %c0_i32 = arith.constant 0 : i32
    %c0_i32_0 = arith.constant 0 : i32
    %c0_i32_1 = arith.constant 0 : i32
    return %c0_i32, %c0_i32_0 : i32, i32
  }
  func.func @transform_3(%arg0: i32) -> (i32, i32) {
    %c0_i32 = arith.constant 0 : i32
    %c0_i32_0 = arith.constant 0 : i32
    return %c0_i32, %arg0 : i32, i32
  }
}

module attributes {stable_mosaic.version = 11 : i64} {
  func.func @_spectral_mix_kernel(%arg0: i32, %arg1: i32, %arg2: memref<1x8x256xf32, #tpu.memory_space<vmem>>, %arg3: memref<1x8x256xf32, #tpu.memory_space<vmem>>, %arg4: memref<8x8x256xbf16, #tpu.memory_space<vmem>>, %arg5: memref<8x8x256xbf16, #tpu.memory_space<vmem>>, %arg6: memref<1x8x256xf32, #tpu.memory_space<vmem>>, %arg7: memref<1x8x256xf32, #tpu.memory_space<vmem>>) attributes {dimension_semantics = [#tpu.dimension_semantics<parallel>, #tpu.dimension_semantics<parallel>], iteration_bounds = array<i64: 1, 2>, scalar_prefetch = 0 : i64, scratch_operands = 0 : i64, tpu.core_type = #tpu.core_type<tc>, window_params = [{transform_indices = @transform_0, window_bounds = array<i64: 1, 8, 256>}, {transform_indices = @transform_1, window_bounds = array<i64: 1, 8, 256>}, {transform_indices = @transform_2, window_bounds = array<i64: 8, 8, 256>}, {transform_indices = @transform_3, window_bounds = array<i64: 8, 8, 256>}, {transform_indices = @transform_4, window_bounds = array<i64: 1, 8, 256>}, {transform_indices = @transform_5, window_bounds = array<i64: 1, 8, 256>}]} {
    %c0 = arith.constant 0 : index
    %c0_0 = arith.constant 0 : index
    %c0_1 = arith.constant 0 : index
    %0 = vector.load %arg2[%c0, %c0_0, %c0_1] : memref<1x8x256xf32, #tpu.memory_space<vmem>>, vector<1x8x256xf32>
    %1 = vector.shape_cast %0 : vector<1x8x256xf32> to vector<8x256xf32>
    %c0_2 = arith.constant 0 : index
    %c0_3 = arith.constant 0 : index
    %c0_4 = arith.constant 0 : index
    %2 = vector.load %arg3[%c0_2, %c0_3, %c0_4] : memref<1x8x256xf32, #tpu.memory_space<vmem>>, vector<1x8x256xf32>
    %3 = vector.shape_cast %2 : vector<1x8x256xf32> to vector<8x256xf32>
    %cst = arith.constant 0.000000e+00 : f32
    %4 = vector.broadcast %cst : f32 to vector<8x256xf32>
    %cst_5 = arith.constant 0.000000e+00 : f32
    %5 = vector.broadcast %cst_5 : f32 to vector<8x256xf32>
    %6 = vector.extract_strided_slice %1 {offsets = [0, 0], sizes = [1, 256], strides = [1, 1]} : vector<8x256xf32> to vector<1x256xf32>
    %7 = vector.extract_strided_slice %3 {offsets = [0, 0], sizes = [1, 256], strides = [1, 1]} : vector<8x256xf32> to vector<1x256xf32>
    %c0_6 = arith.constant 0 : index
    %c0_7 = arith.constant 0 : index
    %c0_8 = arith.constant 0 : index
    %8 = vector.load %arg4[%c0_6, %c0_7, %c0_8] : memref<8x8x256xbf16, #tpu.memory_space<vmem>>, vector<1x8x256xbf16>
    %9 = vector.shape_cast %8 : vector<1x8x256xbf16> to vector<8x256xbf16>
    %10 = arith.extf %9 : vector<8x256xbf16> to vector<8x256xf32>
    %c0_9 = arith.constant 0 : index
    %c0_10 = arith.constant 0 : index
    %c0_11 = arith.constant 0 : index
    %11 = vector.load %arg5[%c0_9, %c0_10, %c0_11] : memref<8x8x256xbf16, #tpu.memory_space<vmem>>, vector<1x8x256xbf16>
    %12 = vector.shape_cast %11 : vector<1x8x256xbf16> to vector<8x256xbf16>
    %13 = arith.extf %12 : vector<8x256xbf16> to vector<8x256xf32>
    %14 = vector.broadcast %6 : vector<1x256xf32> to vector<8x256xf32>
    %15 = arith.mulf %10, %14 : vector<8x256xf32>
    %16 = vector.broadcast %7 : vector<1x256xf32> to vector<8x256xf32>
    %17 = arith.mulf %13, %16 : vector<8x256xf32>
    %18 = arith.subf %15, %17 : vector<8x256xf32>
    %19 = arith.addf %4, %18 : vector<8x256xf32>
    %20 = vector.broadcast %7 : vector<1x256xf32> to vector<8x256xf32>
    %21 = arith.mulf %10, %20 : vector<8x256xf32>
    %22 = vector.broadcast %6 : vector<1x256xf32> to vector<8x256xf32>
    %23 = arith.mulf %13, %22 : vector<8x256xf32>
    %24 = arith.addf %21, %23 : vector<8x256xf32>
    %25 = arith.addf %5, %24 : vector<8x256xf32>
    %26 = vector.extract_strided_slice %1 {offsets = [1, 0], sizes = [1, 256], strides = [1, 1]} : vector<8x256xf32> to vector<1x256xf32>
    %27 = vector.extract_strided_slice %3 {offsets = [1, 0], sizes = [1, 256], strides = [1, 1]} : vector<8x256xf32> to vector<1x256xf32>
    %c1 = arith.constant 1 : index
    %c0_12 = arith.constant 0 : index
    %c0_13 = arith.constant 0 : index
    %28 = vector.load %arg4[%c1, %c0_12, %c0_13] : memref<8x8x256xbf16, #tpu.memory_space<vmem>>, vector<1x8x256xbf16>
    %29 = vector.shape_cast %28 : vector<1x8x256xbf16> to vector<8x256xbf16>
    %30 = arith.extf %29 : vector<8x256xbf16> to vector<8x256xf32>
    %c1_14 = arith.constant 1 : index
    %c0_15 = arith.constant 0 : index
    %c0_16 = arith.constant 0 : index
    %31 = vector.load %arg5[%c1_14, %c0_15, %c0_16] : memref<8x8x256xbf16, #tpu.memory_space<vmem>>, vector<1x8x256xbf16>
    %32 = vector.shape_cast %31 : vector<1x8x256xbf16> to vector<8x256xbf16>
    %33 = arith.extf %32 : vector<8x256xbf16> to vector<8x256xf32>
    %34 = vector.broadcast %26 : vector<1x256xf32> to vector<8x256xf32>
    %35 = arith.mulf %30, %34 : vector<8x256xf32>
    %36 = vector.broadcast %27 : vector<1x256xf32> to vector<8x256xf32>
    %37 = arith.mulf %33, %36 : vector<8x256xf32>
    %38 = arith.subf %35, %37 : vector<8x256xf32>
    %39 = arith.addf %19, %38 : vector<8x256xf32>
    %40 = vector.broadcast %27 : vector<1x256xf32> to vector<8x256xf32>
    %41 = arith.mulf %30, %40 : vector<8x256xf32>
    %42 = vector.broadcast %26 : vector<1x256xf32> to vector<8x256xf32>
    %43 = arith.mulf %33, %42 : vector<8x256xf32>
    %44 = arith.addf %41, %43 : vector<8x256xf32>
    %45 = arith.addf %25, %44 : vector<8x256xf32>
    %46 = vector.extract_strided_slice %1 {offsets = [2, 0], sizes = [1, 256], strides = [1, 1]} : vector<8x256xf32> to vector<1x256xf32>
    %47 = vector.extract_strided_slice %3 {offsets = [2, 0], sizes = [1, 256], strides = [1, 1]} : vector<8x256xf32> to vector<1x256xf32>
    %c2 = arith.constant 2 : index
    %c0_17 = arith.constant 0 : index
    %c0_18 = arith.constant 0 : index
    %48 = vector.load %arg4[%c2, %c0_17, %c0_18] : memref<8x8x256xbf16, #tpu.memory_space<vmem>>, vector<1x8x256xbf16>
    %49 = vector.shape_cast %48 : vector<1x8x256xbf16> to vector<8x256xbf16>
    %50 = arith.extf %49 : vector<8x256xbf16> to vector<8x256xf32>
    %c2_19 = arith.constant 2 : index
    %c0_20 = arith.constant 0 : index
    %c0_21 = arith.constant 0 : index
    %51 = vector.load %arg5[%c2_19, %c0_20, %c0_21] : memref<8x8x256xbf16, #tpu.memory_space<vmem>>, vector<1x8x256xbf16>
    %52 = vector.shape_cast %51 : vector<1x8x256xbf16> to vector<8x256xbf16>
    %53 = arith.extf %52 : vector<8x256xbf16> to vector<8x256xf32>
    %54 = vector.broadcast %46 : vector<1x256xf32> to vector<8x256xf32>
    %55 = arith.mulf %50, %54 : vector<8x256xf32>
    %56 = vector.broadcast %47 : vector<1x256xf32> to vector<8x256xf32>
    %57 = arith.mulf %53, %56 : vector<8x256xf32>
    %58 = arith.subf %55, %57 : vector<8x256xf32>
    %59 = arith.addf %39, %58 : vector<8x256xf32>
    %60 = vector.broadcast %47 : vector<1x256xf32> to vector<8x256xf32>
    %61 = arith.mulf %50, %60 : vector<8x256xf32>
    %62 = vector.broadcast %46 : vector<1x256xf32> to vector<8x256xf32>
    %63 = arith.mulf %53, %62 : vector<8x256xf32>
    %64 = arith.addf %61, %63 : vector<8x256xf32>
    %65 = arith.addf %45, %64 : vector<8x256xf32>
    %66 = vector.extract_strided_slice %1 {offsets = [3, 0], sizes = [1, 256], strides = [1, 1]} : vector<8x256xf32> to vector<1x256xf32>
    %67 = vector.extract_strided_slice %3 {offsets = [3, 0], sizes = [1, 256], strides = [1, 1]} : vector<8x256xf32> to vector<1x256xf32>
    %c3 = arith.constant 3 : index
    %c0_22 = arith.constant 0 : index
    %c0_23 = arith.constant 0 : index
    %68 = vector.load %arg4[%c3, %c0_22, %c0_23] : memref<8x8x256xbf16, #tpu.memory_space<vmem>>, vector<1x8x256xbf16>
    %69 = vector.shape_cast %68 : vector<1x8x256xbf16> to vector<8x256xbf16>
    %70 = arith.extf %69 : vector<8x256xbf16> to vector<8x256xf32>
    %c3_24 = arith.constant 3 : index
    %c0_25 = arith.constant 0 : index
    %c0_26 = arith.constant 0 : index
    %71 = vector.load %arg5[%c3_24, %c0_25, %c0_26] : memref<8x8x256xbf16, #tpu.memory_space<vmem>>, vector<1x8x256xbf16>
    %72 = vector.shape_cast %71 : vector<1x8x256xbf16> to vector<8x256xbf16>
    %73 = arith.extf %72 : vector<8x256xbf16> to vector<8x256xf32>
    %74 = vector.broadcast %66 : vector<1x256xf32> to vector<8x256xf32>
    %75 = arith.mulf %70, %74 : vector<8x256xf32>
    %76 = vector.broadcast %67 : vector<1x256xf32> to vector<8x256xf32>
    %77 = arith.mulf %73, %76 : vector<8x256xf32>
    %78 = arith.subf %75, %77 : vector<8x256xf32>
    %79 = arith.addf %59, %78 : vector<8x256xf32>
    %80 = vector.broadcast %67 : vector<1x256xf32> to vector<8x256xf32>
    %81 = arith.mulf %70, %80 : vector<8x256xf32>
    %82 = vector.broadcast %66 : vector<1x256xf32> to vector<8x256xf32>
    %83 = arith.mulf %73, %82 : vector<8x256xf32>
    %84 = arith.addf %81, %83 : vector<8x256xf32>
    %85 = arith.addf %65, %84 : vector<8x256xf32>
    %86 = vector.extract_strided_slice %1 {offsets = [4, 0], sizes = [1, 256], strides = [1, 1]} : vector<8x256xf32> to vector<1x256xf32>
    %87 = vector.extract_strided_slice %3 {offsets = [4, 0], sizes = [1, 256], strides = [1, 1]} : vector<8x256xf32> to vector<1x256xf32>
    %c4 = arith.constant 4 : index
    %c0_27 = arith.constant 0 : index
    %c0_28 = arith.constant 0 : index
    %88 = vector.load %arg4[%c4, %c0_27, %c0_28] : memref<8x8x256xbf16, #tpu.memory_space<vmem>>, vector<1x8x256xbf16>
    %89 = vector.shape_cast %88 : vector<1x8x256xbf16> to vector<8x256xbf16>
    %90 = arith.extf %89 : vector<8x256xbf16> to vector<8x256xf32>
    %c4_29 = arith.constant 4 : index
    %c0_30 = arith.constant 0 : index
    %c0_31 = arith.constant 0 : index
    %91 = vector.load %arg5[%c4_29, %c0_30, %c0_31] : memref<8x8x256xbf16, #tpu.memory_space<vmem>>, vector<1x8x256xbf16>
    %92 = vector.shape_cast %91 : vector<1x8x256xbf16> to vector<8x256xbf16>
    %93 = arith.extf %92 : vector<8x256xbf16> to vector<8x256xf32>
    %94 = vector.broadcast %86 : vector<1x256xf32> to vector<8x256xf32>
    %95 = arith.mulf %90, %94 : vector<8x256xf32>
    %96 = vector.broadcast %87 : vector<1x256xf32> to vector<8x256xf32>
    %97 = arith.mulf %93, %96 : vector<8x256xf32>
    %98 = arith.subf %95, %97 : vector<8x256xf32>
    %99 = arith.addf %79, %98 : vector<8x256xf32>
    %100 = vector.broadcast %87 : vector<1x256xf32> to vector<8x256xf32>
    %101 = arith.mulf %90, %100 : vector<8x256xf32>
    %102 = vector.broadcast %86 : vector<1x256xf32> to vector<8x256xf32>
    %103 = arith.mulf %93, %102 : vector<8x256xf32>
    %104 = arith.addf %101, %103 : vector<8x256xf32>
    %105 = arith.addf %85, %104 : vector<8x256xf32>
    %106 = vector.extract_strided_slice %1 {offsets = [5, 0], sizes = [1, 256], strides = [1, 1]} : vector<8x256xf32> to vector<1x256xf32>
    %107 = vector.extract_strided_slice %3 {offsets = [5, 0], sizes = [1, 256], strides = [1, 1]} : vector<8x256xf32> to vector<1x256xf32>
    %c5 = arith.constant 5 : index
    %c0_32 = arith.constant 0 : index
    %c0_33 = arith.constant 0 : index
    %108 = vector.load %arg4[%c5, %c0_32, %c0_33] : memref<8x8x256xbf16, #tpu.memory_space<vmem>>, vector<1x8x256xbf16>
    %109 = vector.shape_cast %108 : vector<1x8x256xbf16> to vector<8x256xbf16>
    %110 = arith.extf %109 : vector<8x256xbf16> to vector<8x256xf32>
    %c5_34 = arith.constant 5 : index
    %c0_35 = arith.constant 0 : index
    %c0_36 = arith.constant 0 : index
    %111 = vector.load %arg5[%c5_34, %c0_35, %c0_36] : memref<8x8x256xbf16, #tpu.memory_space<vmem>>, vector<1x8x256xbf16>
    %112 = vector.shape_cast %111 : vector<1x8x256xbf16> to vector<8x256xbf16>
    %113 = arith.extf %112 : vector<8x256xbf16> to vector<8x256xf32>
    %114 = vector.broadcast %106 : vector<1x256xf32> to vector<8x256xf32>
    %115 = arith.mulf %110, %114 : vector<8x256xf32>
    %116 = vector.broadcast %107 : vector<1x256xf32> to vector<8x256xf32>
    %117 = arith.mulf %113, %116 : vector<8x256xf32>
    %118 = arith.subf %115, %117 : vector<8x256xf32>
    %119 = arith.addf %99, %118 : vector<8x256xf32>
    %120 = vector.broadcast %107 : vector<1x256xf32> to vector<8x256xf32>
    %121 = arith.mulf %110, %120 : vector<8x256xf32>
    %122 = vector.broadcast %106 : vector<1x256xf32> to vector<8x256xf32>
    %123 = arith.mulf %113, %122 : vector<8x256xf32>
    %124 = arith.addf %121, %123 : vector<8x256xf32>
    %125 = arith.addf %105, %124 : vector<8x256xf32>
    %126 = vector.extract_strided_slice %1 {offsets = [6, 0], sizes = [1, 256], strides = [1, 1]} : vector<8x256xf32> to vector<1x256xf32>
    %127 = vector.extract_strided_slice %3 {offsets = [6, 0], sizes = [1, 256], strides = [1, 1]} : vector<8x256xf32> to vector<1x256xf32>
    %c6 = arith.constant 6 : index
    %c0_37 = arith.constant 0 : index
    %c0_38 = arith.constant 0 : index
    %128 = vector.load %arg4[%c6, %c0_37, %c0_38] : memref<8x8x256xbf16, #tpu.memory_space<vmem>>, vector<1x8x256xbf16>
    %129 = vector.shape_cast %128 : vector<1x8x256xbf16> to vector<8x256xbf16>
    %130 = arith.extf %129 : vector<8x256xbf16> to vector<8x256xf32>
    %c6_39 = arith.constant 6 : index
    %c0_40 = arith.constant 0 : index
    %c0_41 = arith.constant 0 : index
    %131 = vector.load %arg5[%c6_39, %c0_40, %c0_41] : memref<8x8x256xbf16, #tpu.memory_space<vmem>>, vector<1x8x256xbf16>
    %132 = vector.shape_cast %131 : vector<1x8x256xbf16> to vector<8x256xbf16>
    %133 = arith.extf %132 : vector<8x256xbf16> to vector<8x256xf32>
    %134 = vector.broadcast %126 : vector<1x256xf32> to vector<8x256xf32>
    %135 = arith.mulf %130, %134 : vector<8x256xf32>
    %136 = vector.broadcast %127 : vector<1x256xf32> to vector<8x256xf32>
    %137 = arith.mulf %133, %136 : vector<8x256xf32>
    %138 = arith.subf %135, %137 : vector<8x256xf32>
    %139 = arith.addf %119, %138 : vector<8x256xf32>
    %140 = vector.broadcast %127 : vector<1x256xf32> to vector<8x256xf32>
    %141 = arith.mulf %130, %140 : vector<8x256xf32>
    %142 = vector.broadcast %126 : vector<1x256xf32> to vector<8x256xf32>
    %143 = arith.mulf %133, %142 : vector<8x256xf32>
    %144 = arith.addf %141, %143 : vector<8x256xf32>
    %145 = arith.addf %125, %144 : vector<8x256xf32>
    %146 = vector.extract_strided_slice %1 {offsets = [7, 0], sizes = [1, 256], strides = [1, 1]} : vector<8x256xf32> to vector<1x256xf32>
    %147 = vector.extract_strided_slice %3 {offsets = [7, 0], sizes = [1, 256], strides = [1, 1]} : vector<8x256xf32> to vector<1x256xf32>
    %c7 = arith.constant 7 : index
    %c0_42 = arith.constant 0 : index
    %c0_43 = arith.constant 0 : index
    %148 = vector.load %arg4[%c7, %c0_42, %c0_43] : memref<8x8x256xbf16, #tpu.memory_space<vmem>>, vector<1x8x256xbf16>
    %149 = vector.shape_cast %148 : vector<1x8x256xbf16> to vector<8x256xbf16>
    %150 = arith.extf %149 : vector<8x256xbf16> to vector<8x256xf32>
    %c7_44 = arith.constant 7 : index
    %c0_45 = arith.constant 0 : index
    %c0_46 = arith.constant 0 : index
    %151 = vector.load %arg5[%c7_44, %c0_45, %c0_46] : memref<8x8x256xbf16, #tpu.memory_space<vmem>>, vector<1x8x256xbf16>
    %152 = vector.shape_cast %151 : vector<1x8x256xbf16> to vector<8x256xbf16>
    %153 = arith.extf %152 : vector<8x256xbf16> to vector<8x256xf32>
    %154 = vector.broadcast %146 : vector<1x256xf32> to vector<8x256xf32>
    %155 = arith.mulf %150, %154 : vector<8x256xf32>
    %156 = vector.broadcast %147 : vector<1x256xf32> to vector<8x256xf32>
    %157 = arith.mulf %153, %156 : vector<8x256xf32>
    %158 = arith.subf %155, %157 : vector<8x256xf32>
    %159 = arith.addf %139, %158 : vector<8x256xf32>
    %160 = vector.broadcast %147 : vector<1x256xf32> to vector<8x256xf32>
    %161 = arith.mulf %150, %160 : vector<8x256xf32>
    %162 = vector.broadcast %146 : vector<1x256xf32> to vector<8x256xf32>
    %163 = arith.mulf %153, %162 : vector<8x256xf32>
    %164 = arith.addf %161, %163 : vector<8x256xf32>
    %165 = arith.addf %145, %164 : vector<8x256xf32>
    %c0_47 = arith.constant 0 : index
    %c0_48 = arith.constant 0 : index
    %c0_49 = arith.constant 0 : index
    %166 = vector.load %arg6[%c0_47, %c0_48, %c0_49] : memref<1x8x256xf32, #tpu.memory_space<vmem>>, vector<1x8x256xf32>
    %167 = vector.shape_cast %166 : vector<1x8x256xf32> to vector<8x256xf32>
    %168 = vector.shape_cast %159 : vector<8x256xf32> to vector<1x8x256xf32>
    tpu.vector_store %arg6[%c0_47, %c0_48, %c0_49], %168 {strides = array<i32>} : memref<1x8x256xf32, #tpu.memory_space<vmem>>, vector<1x8x256xf32>,
    %c0_50 = arith.constant 0 : index
    %c0_51 = arith.constant 0 : index
    %c0_52 = arith.constant 0 : index
    %169 = vector.load %arg7[%c0_50, %c0_51, %c0_52] : memref<1x8x256xf32, #tpu.memory_space<vmem>>, vector<1x8x256xf32>
    %170 = vector.shape_cast %169 : vector<1x8x256xf32> to vector<8x256xf32>
    %171 = vector.shape_cast %165 : vector<8x256xf32> to vector<1x8x256xf32>
    tpu.vector_store %arg7[%c0_50, %c0_51, %c0_52], %171 {strides = array<i32>} : memref<1x8x256xf32, #tpu.memory_space<vmem>>, vector<1x8x256xf32>,
    return
  }
  func.func @transform_0(%arg0: i32, %arg1: i32) -> (i32, i32, i32) {
    %c0_i32 = arith.constant 0 : i32
    %c0_i32_0 = arith.constant 0 : i32
    return %arg1, %c0_i32, %arg0 : i32, i32, i32
  }
  func.func @transform_1(%arg0: i32, %arg1: i32) -> (i32, i32, i32) {
    %c0_i32 = arith.constant 0 : i32
    %c0_i32_0 = arith.constant 0 : i32
    return %arg1, %c0_i32, %arg0 : i32, i32, i32
  }
  func.func @transform_2(%arg0: i32, %arg1: i32) -> (i32, i32, i32) {
    %c0_i32 = arith.constant 0 : i32
    %c0_i32_0 = arith.constant 0 : i32
    %c0_i32_1 = arith.constant 0 : i32
    return %c0_i32, %c0_i32_0, %arg0 : i32, i32, i32
  }
  func.func @transform_3(%arg0: i32, %arg1: i32) -> (i32, i32, i32) {
    %c0_i32 = arith.constant 0 : i32
    %c0_i32_0 = arith.constant 0 : i32
    %c0_i32_1 = arith.constant 0 : i32
    return %c0_i32, %c0_i32_0, %arg0 : i32, i32, i32
  }
  func.func @transform_4(%arg0: i32, %arg1: i32) -> (i32, i32, i32) {
    %c0_i32 = arith.constant 0 : i32
    %c0_i32_0 = arith.constant 0 : i32
    return %arg1, %c0_i32, %arg0 : i32, i32, i32
  }
  func.func @transform_5(%arg0: i32, %arg1: i32) -> (i32, i32, i32) {
    %c0_i32 = arith.constant 0 : i32
    %c0_i32_0 = arith.constant 0 : i32
    return %arg1, %c0_i32, %arg0 : i32, i32, i32
  }
}

module attributes {stable_mosaic.version = 11 : i64} {
  func.func @_linear_kernel(%arg0: i32, %arg1: memref<8x512xf32, #tpu.memory_space<vmem>>, %arg2: memref<8x8xf32, #tpu.memory_space<vmem>>, %arg3: memref<8x1xf32, #tpu.memory_space<vmem>>, %arg4: memref<8x512xf32, #tpu.memory_space<vmem>>, %arg5: memref<8x512xf32, #tpu.memory_space<vmem>>) attributes {dimension_semantics = [#tpu.dimension_semantics<parallel>], iteration_bounds = array<i64: 2>, scalar_prefetch = 0 : i64, scratch_operands = 0 : i64, tpu.core_type = #tpu.core_type<tc>, window_params = [{transform_indices = @transform_0, window_bounds = array<i64: 8, 512>}, {pipeline_mode = #tpu.pipeline_mode<synchronous>, transform_indices = @transform_1, window_bounds = array<i64: 8, 8>}, {pipeline_mode = #tpu.pipeline_mode<synchronous>, transform_indices = @transform_2, window_bounds = array<i64: 8, 1>}, {transform_indices = @transform_3, window_bounds = array<i64: 8, 512>}, {transform_indices = @transform_4, window_bounds = array<i64: 8, 512>}]} {
    %c0 = arith.constant 0 : index
    %c0_0 = arith.constant 0 : index
    %0 = vector.load %arg2[%c0, %c0_0] : memref<8x8xf32, #tpu.memory_space<vmem>>, vector<8x8xf32>
    %1 = arith.truncf %0 : vector<8x8xf32> to vector<8x8xbf16>
    %c0_1 = arith.constant 0 : index
    %c0_2 = arith.constant 0 : index
    %2 = vector.load %arg1[%c0_1, %c0_2] : memref<8x512xf32, #tpu.memory_space<vmem>>, vector<8x512xf32>
    %3 = arith.truncf %2 : vector<8x512xf32> to vector<8x512xbf16>
    %cst = arith.constant dense<0.000000e+00> : vector<8x512xf32>
    %4 = tpu.matmul %1, %3, %cst {dimension_numbers = #tpu.dot_dimension_numbers<[1], [0], [0], [1], [0, 0, 1, 1], [], []>} : vector<8x8xbf16>, vector<8x512xbf16>, vector<8x512xf32> -> vector<8x512xf32>
    %c0_3 = arith.constant 0 : index
    %c0_4 = arith.constant 0 : index
    %5 = vector.load %arg3[%c0_3, %c0_4] : memref<8x1xf32, #tpu.memory_space<vmem>>, vector<8x1xf32>
    %6 = vector.broadcast %5 : vector<8x1xf32> to vector<8x512xf32>
    %7 = arith.addf %4, %6 : vector<8x512xf32>
    %c0_5 = arith.constant 0 : index
    %c0_6 = arith.constant 0 : index
    %8 = vector.load %arg4[%c0_5, %c0_6] : memref<8x512xf32, #tpu.memory_space<vmem>>, vector<8x512xf32>
    %9 = arith.addf %7, %8 : vector<8x512xf32>
    %cst_7 = arith.constant 5.000000e-01 : f32
    %10 = vector.broadcast %cst_7 : f32 to vector<8x512xf32>
    %11 = arith.mulf %10, %9 : vector<8x512xf32>
    %cst_8 = arith.constant 0.707106769 : f32
    %12 = vector.broadcast %cst_8 : f32 to vector<8x512xf32>
    %13 = arith.mulf %9, %12 : vector<8x512xf32>
    %14 = math.absf %13 : vector<8x512xf32>
    %cst_9 = arith.constant 0.327591091 : f32
    %15 = vector.broadcast %cst_9 : f32 to vector<8x512xf32>
    %16 = arith.mulf %15, %14 : vector<8x512xf32>
    %cst_10 = arith.constant 1.000000e+00 : f32
    %17 = vector.broadcast %cst_10 : f32 to vector<8x512xf32>
    %18 = arith.addf %17, %16 : vector<8x512xf32>
    %cst_11 = arith.constant 1.000000e+00 : f32
    %19 = vector.broadcast %cst_11 : f32 to vector<8x512xf32>
    %20 = arith.divf %19, %18 : vector<8x512xf32>
    %cst_12 = arith.constant 1.06140542 : f32
    %21 = vector.broadcast %cst_12 : f32 to vector<8x512xf32>
    %22 = arith.mulf %20, %21 : vector<8x512xf32>
    %cst_13 = arith.constant -1.45315206 : f32
    %23 = vector.broadcast %cst_13 : f32 to vector<8x512xf32>
    %24 = arith.addf %23, %22 : vector<8x512xf32>
    %25 = arith.mulf %20, %24 : vector<8x512xf32>
    %cst_14 = arith.constant 1.42141378 : f32
    %26 = vector.broadcast %cst_14 : f32 to vector<8x512xf32>
    %27 = arith.addf %26, %25 : vector<8x512xf32>
    %28 = arith.mulf %20, %27 : vector<8x512xf32>
    %cst_15 = arith.constant -0.284496725 : f32
    %29 = vector.broadcast %cst_15 : f32 to vector<8x512xf32>
    %30 = arith.addf %29, %28 : vector<8x512xf32>
    %31 = arith.mulf %20, %30 : vector<8x512xf32>
    %cst_16 = arith.constant 0.254829586 : f32
    %32 = vector.broadcast %cst_16 : f32 to vector<8x512xf32>
    %33 = arith.addf %32, %31 : vector<8x512xf32>
    %34 = arith.mulf %20, %33 : vector<8x512xf32>
    %cst_17 = arith.constant 0.000000e+00 : f32
    %35 = vector.broadcast %cst_17 : f32 to vector<8x512xf32>
    %36 = arith.subf %35, %14 : vector<8x512xf32>
    %37 = arith.mulf %36, %14 : vector<8x512xf32>
    %38 = math.exp %37 : vector<8x512xf32>
    %39 = arith.mulf %34, %38 : vector<8x512xf32>
    %cst_18 = arith.constant 1.000000e+00 : f32
    %40 = vector.broadcast %cst_18 : f32 to vector<8x512xf32>
    %41 = arith.subf %40, %39 : vector<8x512xf32>
    %cst_19 = arith.constant 0.000000e+00 : f32
    %42 = vector.broadcast %cst_19 : f32 to vector<8x512xf32>
    %43 = arith.cmpf oge, %13, %42 : vector<8x512xf32>
    %cst_20 = arith.constant 0.000000e+00 : f32
    %44 = vector.broadcast %cst_20 : f32 to vector<8x512xf32>
    %45 = arith.subf %44, %41 : vector<8x512xf32>
    %46 = arith.select %43, %41, %45 : vector<8x512xi1>, vector<8x512xf32>
    %cst_21 = arith.constant 1.000000e+00 : f32
    %47 = vector.broadcast %cst_21 : f32 to vector<8x512xf32>
    %48 = arith.addf %47, %46 : vector<8x512xf32>
    %49 = arith.mulf %11, %48 : vector<8x512xf32>
    %c0_22 = arith.constant 0 : index
    %c0_23 = arith.constant 0 : index
    %50 = vector.load %arg5[%c0_22, %c0_23] : memref<8x512xf32, #tpu.memory_space<vmem>>, vector<8x512xf32>
    tpu.vector_store %arg5[%c0_22, %c0_23], %49 {strides = array<i32>} : memref<8x512xf32, #tpu.memory_space<vmem>>, vector<8x512xf32>,
    return
  }
  func.func @transform_0(%arg0: i32) -> (i32, i32) {
    %c0_i32 = arith.constant 0 : i32
    %c0_i32_0 = arith.constant 0 : i32
    return %c0_i32, %arg0 : i32, i32
  }
  func.func @transform_1(%arg0: i32) -> (i32, i32) {
    %c0_i32 = arith.constant 0 : i32
    %c0_i32_0 = arith.constant 0 : i32
    %c0_i32_1 = arith.constant 0 : i32
    return %c0_i32, %c0_i32_0 : i32, i32
  }
  func.func @transform_2(%arg0: i32) -> (i32, i32) {
    %c0_i32 = arith.constant 0 : i32
    %c0_i32_0 = arith.constant 0 : i32
    %c0_i32_1 = arith.constant 0 : i32
    return %c0_i32, %c0_i32_0 : i32, i32
  }
  func.func @transform_3(%arg0: i32) -> (i32, i32) {
    %c0_i32 = arith.constant 0 : i32
    %c0_i32_0 = arith.constant 0 : i32
    return %c0_i32, %arg0 : i32, i32
  }
  func.func @transform_4(%arg0: i32) -> (i32, i32) {
    %c0_i32 = arith.constant 0 : i32
    %c0_i32_0 = arith.constant 0 : i32
    return %c0_i32, %arg0 : i32, i32
  }
}

module attributes {stable_mosaic.version = 11 : i64} {
  func.func @_head_kernel(%arg0: i32, %arg1: memref<8x512xf32, #tpu.memory_space<vmem>>, %arg2: memref<8x512xf32, #tpu.memory_space<vmem>>, %arg3: memref<8x8xf32, #tpu.memory_space<vmem>>, %arg4: memref<8x1xf32, #tpu.memory_space<vmem>>, %arg5: memref<16x8xf32, #tpu.memory_space<vmem>>, %arg6: memref<16x1xf32, #tpu.memory_space<vmem>>, %arg7: memref<1x16xf32, #tpu.memory_space<vmem>>, %arg8: memref<1x1xf32, #tpu.memory_space<vmem>>, %arg9: memref<1x512xf32, #tpu.memory_space<vmem>>) attributes {dimension_semantics = [#tpu.dimension_semantics<parallel>], iteration_bounds = array<i64: 2>, scalar_prefetch = 0 : i64, scratch_operands = 0 : i64, tpu.core_type = #tpu.core_type<tc>, window_params = [{transform_indices = @transform_0, window_bounds = array<i64: 8, 512>}, {transform_indices = @transform_1, window_bounds = array<i64: 8, 512>}, {pipeline_mode = #tpu.pipeline_mode<synchronous>, transform_indices = @transform_2, window_bounds = array<i64: 8, 8>}, {pipeline_mode = #tpu.pipeline_mode<synchronous>, transform_indices = @transform_3, window_bounds = array<i64: 8, 1>}, {pipeline_mode = #tpu.pipeline_mode<synchronous>, transform_indices = @transform_4, window_bounds = array<i64: 16, 8>}, {pipeline_mode = #tpu.pipeline_mode<synchronous>, transform_indices = @transform_5, window_bounds = array<i64: 16, 1>}, {pipeline_mode = #tpu.pipeline_mode<synchronous>, transform_indices = @transform_6, window_bounds = array<i64: 1, 16>}, {pipeline_mode = #tpu.pipeline_mode<synchronous>, transform_indices = @transform_7, window_bounds = array<i64: 1, 1>}, {transform_indices = @transform_8, window_bounds = array<i64: 1, 512>}]} {
    %c0 = arith.constant 0 : index
    %c0_0 = arith.constant 0 : index
    %0 = vector.load %arg1[%c0, %c0_0] : memref<8x512xf32, #tpu.memory_space<vmem>>, vector<8x512xf32>
    %1 = arith.truncf %0 : vector<8x512xf32> to vector<8x512xbf16>
    %c0_1 = arith.constant 0 : index
    %c0_2 = arith.constant 0 : index
    %2 = vector.load %arg3[%c0_1, %c0_2] : memref<8x8xf32, #tpu.memory_space<vmem>>, vector<8x8xf32>
    %3 = arith.truncf %2 : vector<8x8xf32> to vector<8x8xbf16>
    %cst = arith.constant dense<0.000000e+00> : vector<8x512xf32>
    %4 = tpu.matmul %3, %1, %cst {dimension_numbers = #tpu.dot_dimension_numbers<[1], [0], [0], [1], [0, 0, 1, 1], [], []>} : vector<8x8xbf16>, vector<8x512xbf16>, vector<8x512xf32> -> vector<8x512xf32>
    %c0_3 = arith.constant 0 : index
    %c0_4 = arith.constant 0 : index
    %5 = vector.load %arg4[%c0_3, %c0_4] : memref<8x1xf32, #tpu.memory_space<vmem>>, vector<8x1xf32>
    %6 = vector.broadcast %5 : vector<8x1xf32> to vector<8x512xf32>
    %7 = arith.addf %4, %6 : vector<8x512xf32>
    %c0_5 = arith.constant 0 : index
    %c0_6 = arith.constant 0 : index
    %8 = vector.load %arg2[%c0_5, %c0_6] : memref<8x512xf32, #tpu.memory_space<vmem>>, vector<8x512xf32>
    %9 = arith.addf %7, %8 : vector<8x512xf32>
    %c0_7 = arith.constant 0 : index
    %c0_8 = arith.constant 0 : index
    %10 = vector.load %arg5[%c0_7, %c0_8] : memref<16x8xf32, #tpu.memory_space<vmem>>, vector<16x8xf32>
    %11 = arith.truncf %10 : vector<16x8xf32> to vector<16x8xbf16>
    %12 = arith.truncf %9 : vector<8x512xf32> to vector<8x512xbf16>
    %cst_9 = arith.constant dense<0.000000e+00> : vector<16x512xf32>
    %13 = tpu.matmul %11, %12, %cst_9 {dimension_numbers = #tpu.dot_dimension_numbers<[1], [0], [0], [1], [0, 0, 1, 1], [], []>} : vector<16x8xbf16>, vector<8x512xbf16>, vector<16x512xf32> -> vector<16x512xf32>
    %c0_10 = arith.constant 0 : index
    %c0_11 = arith.constant 0 : index
    %14 = vector.load %arg6[%c0_10, %c0_11] : memref<16x1xf32, #tpu.memory_space<vmem>>, vector<16x1xf32>
    %15 = vector.broadcast %14 : vector<16x1xf32> to vector<16x512xf32>
    %16 = arith.addf %13, %15 : vector<16x512xf32>
    %cst_12 = arith.constant 5.000000e-01 : f32
    %17 = vector.broadcast %cst_12 : f32 to vector<16x512xf32>
    %18 = arith.mulf %17, %16 : vector<16x512xf32>
    %cst_13 = arith.constant 0.707106769 : f32
    %19 = vector.broadcast %cst_13 : f32 to vector<16x512xf32>
    %20 = arith.mulf %16, %19 : vector<16x512xf32>
    %21 = math.absf %20 : vector<16x512xf32>
    %cst_14 = arith.constant 0.327591091 : f32
    %22 = vector.broadcast %cst_14 : f32 to vector<16x512xf32>
    %23 = arith.mulf %22, %21 : vector<16x512xf32>
    %cst_15 = arith.constant 1.000000e+00 : f32
    %24 = vector.broadcast %cst_15 : f32 to vector<16x512xf32>
    %25 = arith.addf %24, %23 : vector<16x512xf32>
    %cst_16 = arith.constant 1.000000e+00 : f32
    %26 = vector.broadcast %cst_16 : f32 to vector<16x512xf32>
    %27 = arith.divf %26, %25 : vector<16x512xf32>
    %cst_17 = arith.constant 1.06140542 : f32
    %28 = vector.broadcast %cst_17 : f32 to vector<16x512xf32>
    %29 = arith.mulf %27, %28 : vector<16x512xf32>
    %cst_18 = arith.constant -1.45315206 : f32
    %30 = vector.broadcast %cst_18 : f32 to vector<16x512xf32>
    %31 = arith.addf %30, %29 : vector<16x512xf32>
    %32 = arith.mulf %27, %31 : vector<16x512xf32>
    %cst_19 = arith.constant 1.42141378 : f32
    %33 = vector.broadcast %cst_19 : f32 to vector<16x512xf32>
    %34 = arith.addf %33, %32 : vector<16x512xf32>
    %35 = arith.mulf %27, %34 : vector<16x512xf32>
    %cst_20 = arith.constant -0.284496725 : f32
    %36 = vector.broadcast %cst_20 : f32 to vector<16x512xf32>
    %37 = arith.addf %36, %35 : vector<16x512xf32>
    %38 = arith.mulf %27, %37 : vector<16x512xf32>
    %cst_21 = arith.constant 0.254829586 : f32
    %39 = vector.broadcast %cst_21 : f32 to vector<16x512xf32>
    %40 = arith.addf %39, %38 : vector<16x512xf32>
    %41 = arith.mulf %27, %40 : vector<16x512xf32>
    %cst_22 = arith.constant 0.000000e+00 : f32
    %42 = vector.broadcast %cst_22 : f32 to vector<16x512xf32>
    %43 = arith.subf %42, %21 : vector<16x512xf32>
    %44 = arith.mulf %43, %21 : vector<16x512xf32>
    %45 = math.exp %44 : vector<16x512xf32>
    %46 = arith.mulf %41, %45 : vector<16x512xf32>
    %cst_23 = arith.constant 1.000000e+00 : f32
    %47 = vector.broadcast %cst_23 : f32 to vector<16x512xf32>
    %48 = arith.subf %47, %46 : vector<16x512xf32>
    %cst_24 = arith.constant 0.000000e+00 : f32
    %49 = vector.broadcast %cst_24 : f32 to vector<16x512xf32>
    %50 = arith.cmpf oge, %20, %49 : vector<16x512xf32>
    %cst_25 = arith.constant 0.000000e+00 : f32
    %51 = vector.broadcast %cst_25 : f32 to vector<16x512xf32>
    %52 = arith.subf %51, %48 : vector<16x512xf32>
    %53 = arith.select %50, %48, %52 : vector<16x512xi1>, vector<16x512xf32>
    %cst_26 = arith.constant 1.000000e+00 : f32
    %54 = vector.broadcast %cst_26 : f32 to vector<16x512xf32>
    %55 = arith.addf %54, %53 : vector<16x512xf32>
    %56 = arith.mulf %18, %55 : vector<16x512xf32>
    %c0_27 = arith.constant 0 : index
    %c0_28 = arith.constant 0 : index
    %57 = vector.load %arg7[%c0_27, %c0_28] : memref<1x16xf32, #tpu.memory_space<vmem>>, vector<1x16xf32>
    %58 = arith.truncf %57 : vector<1x16xf32> to vector<1x16xbf16>
    %59 = arith.truncf %56 : vector<16x512xf32> to vector<16x512xbf16>
    %cst_29 = arith.constant dense<0.000000e+00> : vector<1x512xf32>
    %60 = tpu.matmul %58, %59, %cst_29 {dimension_numbers = #tpu.dot_dimension_numbers<[1], [0], [0], [1], [0, 0, 1, 1], [], []>} : vector<1x16xbf16>, vector<16x512xbf16>, vector<1x512xf32> -> vector<1x512xf32>
    %c0_30 = arith.constant 0 : index
    %c0_31 = arith.constant 0 : index
    %61 = vector.load %arg8[%c0_30, %c0_31] : memref<1x1xf32, #tpu.memory_space<vmem>>, vector<1x1xf32>
    %62 = vector.broadcast %61 : vector<1x1xf32> to vector<1x512xf32>
    %63 = arith.addf %60, %62 : vector<1x512xf32>
    %c0_32 = arith.constant 0 : index
    %c0_33 = arith.constant 0 : index
    %64 = vector.load %arg9[%c0_32, %c0_33] : memref<1x512xf32, #tpu.memory_space<vmem>>, vector<1x512xf32>
    tpu.vector_store %arg9[%c0_32, %c0_33], %63 {strides = array<i32>} : memref<1x512xf32, #tpu.memory_space<vmem>>, vector<1x512xf32>,
    return
  }
  func.func @transform_0(%arg0: i32) -> (i32, i32) {
    %c0_i32 = arith.constant 0 : i32
    %c0_i32_0 = arith.constant 0 : i32
    return %c0_i32, %arg0 : i32, i32
  }
  func.func @transform_1(%arg0: i32) -> (i32, i32) {
    %c0_i32 = arith.constant 0 : i32
    %c0_i32_0 = arith.constant 0 : i32
    return %c0_i32, %arg0 : i32, i32
  }
  func.func @transform_2(%arg0: i32) -> (i32, i32) {
    %c0_i32 = arith.constant 0 : i32
    %c0_i32_0 = arith.constant 0 : i32
    %c0_i32_1 = arith.constant 0 : i32
    return %c0_i32, %c0_i32_0 : i32, i32
  }
  func.func @transform_3(%arg0: i32) -> (i32, i32) {
    %c0_i32 = arith.constant 0 : i32
    %c0_i32_0 = arith.constant 0 : i32
    %c0_i32_1 = arith.constant 0 : i32
    return %c0_i32, %c0_i32_0 : i32, i32
  }
  func.func @transform_4(%arg0: i32) -> (i32, i32) {
    %c0_i32 = arith.constant 0 : i32
    %c0_i32_0 = arith.constant 0 : i32
    %c0_i32_1 = arith.constant 0 : i32
    return %c0_i32, %c0_i32_0 : i32, i32
  }
  func.func @transform_5(%arg0: i32) -> (i32, i32) {
    %c0_i32 = arith.constant 0 : i32
    %c0_i32_0 = arith.constant 0 : i32
    %c0_i32_1 = arith.constant 0 : i32
    return %c0_i32, %c0_i32_0 : i32, i32
  }
  func.func @transform_6(%arg0: i32) -> (i32, i32) {
    %c0_i32 = arith.constant 0 : i32
    %c0_i32_0 = arith.constant 0 : i32
    %c0_i32_1 = arith.constant 0 : i32
    return %c0_i32, %c0_i32_0 : i32, i32
  }
  func.func @transform_7(%arg0: i32) -> (i32, i32) {
    %c0_i32 = arith.constant 0 : i32
    %c0_i32_0 = arith.constant 0 : i32
    %c0_i32_1 = arith.constant 0 : i32
    return %c0_i32, %c0_i32_0 : i32, i32
  }
  func.func @transform_8(%arg0: i32) -> (i32, i32) {
    %c0_i32 = arith.constant 0 : i32
    %c0_i32_0 = arith.constant 0 : i32
    return %c0_i32, %arg0 : i32, i32
  }
}

</mosaic_0001>

<bundles_post_ra>
// kernel: fnn3d_forward.7
= control target key start
LH: loop header
LB: loop body
LE: loop exit
PB: predicated region body
PF: predicated region fallthrough
CT: control target
= control target key end

     0   :  { %s385_s12 = smov 0   ;;  %s416_s0 = inlined_call_operand.vmem [shape: f32[4,1024], index: 0, kind: input, shape index: {}]   ;;  %s417_s1 = inlined_call_operand.vmem [shape: f32[8,4], index: 1, kind: input, shape index: {}]   ;;  %s418_s2 = inlined_call_operand.vmem [shape: f32[8,1], index: 2, kind: input, shape index: {}]   ;;  %s419_s3 = inlined_call_operand.vmem [shape: f32[8,1024], index: 3, kind: output, shape index: {}]  }
   0x1 LB: > { %s331_s13 = sadd.s32 4294967295, %s362_s12   ;;  %p335_p0 = scmp.ge.s32.totalorder %s362_s12, 1  ;;  %s362_s12 = sphi %s385_s12, %s13_s12  }
   0x2   : > { %p138_p1 = scmp.lt.s32.totalorder %s362_s12, 3 }
   0x4   : > { %p139_p2 = pnand %p335_p0, %p138_p1 }
   0x5   : > { %s336_s14 = sshll.u32 (!%p139_p2), %s331_s13, 2 }
   0x6   : > { %142 = sbr.rel (%p139_p2) target bundleno = 170 (0xaa), region = 32  ;;  %p163_p3 = scmp.lt.s32.totalorder (!%p139_p2), %s336_s14, 7 }
   0xb   : > { %v196_v0 = vld [vmem:[%s418_s2] sm:$0xff]  ;;  %v364_v1 = vmov 0   ;;  %s421_s14 = smov (!%p163_p3, %s336_s14), 7  ;;  %vm206_vm0 = vcmask 1041408   ;;  %vm202_vm1 = vcmask 31744  }
   0xc   : > { %355 = vset.pattern.permute.xlu0 %v364_v1  ;;  %s337_s17 = sshll.u32 %s421_s14, 2  ;;  %v175_v4 = vld [vmem:[%s417_s1] sm:$0xff]  ;;  %s339_s23 = sshll.u32 %s421_s14, 3 }
   0xd   : > { %199 = vperm.xlu0 %355, %v196_v0   ;;  %s166_s20 = scalar_lea.vmem %s416_s0, %s337_s17  ;;  %v176_v15 = vpack.c.bf16 %v175_v4, %v175_v4  ;;  %s172_s26 = scalar_lea.vmem %s419_s3, %s339_s23 }
   0xe   : > { %v177_v2 = vld [vmem:[%s166_s20] sm:$0xff]  ;;  %v178_v3 = vld [vmem:[%s166_s20 + $0x8] sm:$0xff] }
   0xf   : > { %181 = vst [vmem:[#allocation1] ss:$2 sm:$0xff] %v177_v2 }
  0x10   : > { %183 = vst [vmem:[#allocation1 + $0x10] ss:$2 sm:$0xff] %v178_v3 }
  0x16   : > { %v184_v5 = vld.sshfl [vmem:[#allocation1] sm:$0xff pattern:$0x75316420]  ;;  %v185_v6 = vld.sshfl [vmem:[#allocation1 + $0x8] sm:$0xff pattern:$0x75316420] }
  0x17   : > { %v192_v7 = vpack.c.bf16 %v184_v5, %v184_v5  ;;  %v193_v8 = vpack.c.bf16 %v185_v6, %v185_v6  ;;  %v186_v9 = vld.sshfl [vmem:[#allocation1 + $0x10] sm:$0xff pattern:$0x75316420]  ;;  %v187_v10 = vld.sshfl [vmem:[#allocation1 + $0x18] sm:$0xff pattern:$0x75316420] }
  0x18   : > { %v194_v11 = vpack.c.bf16 %v186_v9, %v186_v9  ;;  %v195_v12 = vpack.c.bf16 %v187_v10, %v187_v10 }
  0x19   : > { %v208_v13 = vsel %vm206_vm0, %v192_v7, 0  ;;  %v211_v14 = vsel %vm206_vm0, %v193_v8, 0 }
  0x1a   : > { %226 = vmatpush.bf16.msra.mxu0 %v208_v13  ;;  %239 = vmatpush.bf16.msra.mxu1 %v211_v14  ;;  %v214_v16 = vsel %vm206_vm0, %v194_v11, 0  ;;  %v217_v17 = vsel %vm206_vm0, %v195_v12, 0 }
  0x1b   : > { %252 = vmatpush.bf16.msra.mxu2 %v214_v16  ;;  %265 = vmatpush.bf16.msra.mxu3 %v217_v17 }
  0x1d   : > { %340 = vmatmul.msk.bf16.vlgmr.msra.gmra.mxu0 %vm202_vm1, %v176_v15  ;;  %341 = vmatmul.msk.bf16.vlgmr.msra.gmra.mxu1 %vm202_vm1, %v176_v15 }
  0x1e   : > { %342 = vmatmul.msk.bf16.vlgmr.msra.gmra.mxu2 %vm202_vm1, %v176_v15  ;;  %343 = vmatmul.msk.bf16.vlgmr.msra.gmra.mxu3 %vm202_vm1, %v176_v15 }
  0x7f   : > { %v200_v18 = vpop.permute.xlu0 %199 }
  0x9a   : > { %v228_v19 = vpop.f32.mrf.mxu0  ;;  %v241_v20 = vpop.f32.mrf.mxu1 }
  0x9b   : > { %v229_v21 = vadd.f32 %v228_v19, %v200_v18  ;;  %v242_v22 = vadd.f32 %v241_v20, %v200_v18 }
  0x9d   : > { %271 = vst [vmem:[%s172_s26] sm:$0xff] %v229_v21 }
  0x9e   : > { %272 = vst [vmem:[%s172_s26 + $0x8] sm:$0xff] %v242_v22 }
  0xa1   : > { %v254_v23 = vpop.f32.mrf.mxu2  ;;  %v267_v24 = vpop.f32.mrf.mxu3 }
  0xa2   : > { %v255_v25 = vadd.f32 %v254_v23, %v200_v18  ;;  %v268_v26 = vadd.f32 %v267_v24, %v200_v18  ;;  %v230_v27 = vpop.f32.mrf.mxu0  ;;  %v243_v28 = vpop.f32.mrf.mxu1 }
  0xa4   : > { %273 = vst [vmem:[%s172_s26 + $0x10] sm:$0xff] %v255_v25 }
  0xa5   : > { %274 = vst [vmem:[%s172_s26 + $0x18] sm:$0xff] %v268_v26 }
  0xa9   : > { %v256_v29 = vpop.f32.mrf.mxu2  ;;  %v269_v30 = vpop.f32.mrf.mxu3 }
  0xaa PF: > { %s13_s12 = sadd.s32 1, %s362_s12  }
  0xab   : > { %p10_p4 = scmp.ge.s32.totalorder %s13_s12, 4  }
  0xad   :  { %12 = sbr.rel (!%p10_p4) target bundleno = 1 (0x1), region = 63 }

// kernel: fnn3d_forward.8
= control target key start
LH: loop header
LB: loop body
LE: loop exit
PB: predicated region body
PF: predicated region fallthrough
CT: control target
= control target key end

     0   :  { %s896_s18 = smov 0   ;;  %s898_s19 = smov 0   ;;  %s1361_s0 = inlined_call_operand.vmem [shape: f32[2,8,256], index: 0, kind: input, shape index: {}]   ;;  %s1362_s1 = inlined_call_operand.vmem [shape: f32[2,8,256], index: 1, kind: input, shape index: {}]   ;;  %s1363_s2 = inlined_call_operand.vmem [shape: bf16[8,8,256], index: 2, kind: input, shape index: {}]   ;;  %s1364_s3 = inlined_call_operand.vmem [shape: bf16[8,8,256], index: 3, kind: input, shape index: {}]   ;;  %s1365_s4 = inlined_call_operand.vmem [shape: f32[2,8,256], index: 4, kind: output, shape index: {0}]   ;;  %s1366_s5 = inlined_call_operand.vmem [shape: f32[2,8,256], index: 5, kind: output, shape index: {1}]  }
   0x1   :  { %s900_s20 = smov 0  }
   0x2 LB: > { %s25_s21 = sadd.s32 1, %s860_s19  ;;  %p789_p0 = scmp.ge.s32.totalorder %s864_s20, 1  ;;  %s864_s20 = sphi %s900_s20, %s16_s20   ;;  %s860_s19 = sphi %s898_s19, %s1432_s19   ;;  %s856_s18 = sphi %s896_s18, %s1431_s18  }
   0x3   : > { %p26_p1 = scmp.ge.s32.totalorder %s25_s21, 2  ;;  %p252_p2 = scmp.lt.s32.totalorder %s864_s20, 3 }
   0x5   : > { %s1434_s21 = smov (%p26_p1, %s25_s21), 0  ;;  %p253_p3 = pnand %p789_p0, %p252_p2 }
   0x6   : > { %p317_p4 = scmp.lt.s32.totalorder (!%p253_p3), %s856_s18, 1 }
   0x7   : > { %256 = sbr.rel (%p253_p3) target bundleno = 76 (0x4c), region = 36 }
   0xc   : > { %v917_v0 = vld [vmem:[%s1363_s2] sm:$0xff]  ;;  %v927_v2 = vld [vmem:[%s1363_s2 + $0x8] sm:$0xff]  ;;  %v940_v7 = vld [vmem:[%s1363_s2 + $0x10] sm:$0xff]  ;;  %s1436_s18 = smov (!%p317_p4, %s856_s18), 1 }
   0xd   : > { %v922_v1 = vld [vmem:[%s1364_s3] sm:$0xff]  ;;  %v373_v3 = vunpack.c.l.bf16 %v917_v0  ;;  %v400_v5 = vunpack.c.l.bf16 %v927_v2  ;;  %v935_v6 = vld [vmem:[%s1364_s3 + $0x8] sm:$0xff]  ;;  %v945_v8 = vld [vmem:[%s1364_s3 + $0x10] sm:$0xff]  ;;  %v374_v9 = vunpack.c.h.bf16 %v917_v0  ;;  %v428_v11 = vunpack.c.l.bf16 %v940_v7  ;;  %s986_s25 = sshll.u32 %s1436_s18, 4 }
   0xe   : > { %v376_v4 = vunpack.c.l.bf16 %v922_v1  ;;  %v404_v10 = vunpack.c.l.bf16 %v935_v6  ;;  %v1368_v12 = vunpack.c.l.bf16 %v945_v8  ;;  %v954_v13 = vld [vmem:[%s1363_s2 + $0x18] sm:$0xff]  ;;  %v964_v15 = vld [vmem:[%s1363_s2 + $0x20] sm:$0xff]  ;;  %v1381_v16 = vunpack.c.h.bf16 %v922_v1  ;;  %v978_v21 = vld [vmem:[%s1363_s2 + $0x28] sm:$0xff]  ;;  %s1011_s8 = scalar_lea.vmem %s1361_s0, %s986_s25  ;;  %s1017_s11 = scalar_lea.vmem %s1362_s1, %s986_s25 }
   0xf   : > { %v959_v14 = vld [vmem:[%s1364_s3 + $0x18] sm:$0xff]  ;;  %v456_v17 = vunpack.c.l.bf16 %v954_v13  ;;  %v484_v19 = vunpack.c.l.bf16 %v964_v15  ;;  %v973_v20 = vld [vmem:[%s1364_s3 + $0x20] sm:$0xff]  ;;  %v983_v22 = vld [vmem:[%s1364_s3 + $0x28] sm:$0xff]  ;;  %v1383_v23 = vunpack.c.h.bf16 %v927_v2  ;;  %v512_v25 = vunpack.c.l.bf16 %v978_v21  ;;  %s1172_s16 = scalar_lea.vmem %s1365_s4, %s986_s25  ;;  %s366_s23 = scalar_lea.vmem %s1366_s5, %s986_s25 }
  0x10   : > { %v1371_v18 = vunpack.c.l.bf16 %v959_v14  ;;  %v1373_v24 = vunpack.c.l.bf16 %v973_v20  ;;  %v1375_v26 = vunpack.c.l.bf16 %v983_v22  ;;  %v994_v27 = vld [vmem:[%s1363_s2 + $0x30] sm:$0xff]  ;;  %v1004_v29 = vld [vmem:[%s1363_s2 + $0x38] sm:$0xff]  ;;  %v1384_v30 = vunpack.c.h.bf16 %v935_v6  ;;  %v1029_v36 = vld [vmem:[%s1011_s8] sm:$0xff] }
  0x11   : > { %v999_v28 = vld [vmem:[%s1364_s3 + $0x30] sm:$0xff]  ;;  %v540_v31 = vunpack.c.l.bf16 %v994_v27  ;;  %v1378_v33 = vunpack.c.l.bf16 %v1004_v29  ;;  %v1025_v34 = vld [vmem:[%s1364_s3 + $0x38] sm:$0xff]  ;;  %v1386_v35 = vunpack.c.h.bf16 %v940_v7  ;;  %v1032_v37 = vld [vmem:[%s1017_s11] sm:$0xff]  ;;  %v433_v39 = vunpack.c.h.bf16 %v945_v8 }
  0x12   : > { %v544_v32 = vunpack.c.l.bf16 %v999_v28  ;;  %v1379_v38 = vunpack.c.l.bf16 %v1025_v34  ;;  %v1391_v40 = vunpack.c.h.bf16 %v954_v13  ;;  %v1389_v41 = vunpack.c.h.bf16 %v959_v14 }
  0x13   : > { %v378_v42 = vperm.slane %v1029_v36, 0  ;;  %v382_v43 = vperm.slane %v1032_v37, 0  ;;  %v406_v44 = vperm.slane %v1029_v36, 1  ;;  %v410_v45 = vperm.slane %v1032_v37, 1 }
  0x14   : > { %v1367_v46 = vperm.slane %v1029_v36, 2  ;;  %v1369_v47 = vperm.slane %v1032_v37, 2  ;;  %v1370_v48 = vperm.slane %v1029_v36, 3  ;;  %v466_v49 = vperm.slane %v1032_v37, 3 }
  0x15   : > { %v380_v50 = vmul.f32 %v378_v42, %v373_v3  ;;  %v384_v51 = vmul.f32 %v382_v43, %v376_v4  ;;  %v408_v52 = vmul.f32 %v406_v44, %v400_v5  ;;  %v412_v53 = vmul.f32 %v410_v45, %v404_v10 }
  0x16   : > { %v436_v54 = vmul.f32 %v1367_v46, %v428_v11  ;;  %v440_v55 = vmul.f32 %v1369_v47, %v1368_v12  ;;  %v464_v56 = vmul.f32 %v1370_v48, %v456_v17  ;;  %v468_v57 = vmul.f32 %v466_v49, %v1371_v18  ;;  %v1083_v47 = vld [vmem:[%s1011_s8 + $0x8] sm:$0xff] }
  0x17   : > { %v386_v58 = vsub.f32 %v380_v50, %v384_v51  ;;  %v414_v59 = vsub.f32 %v408_v52, %v412_v53  ;;  %v1372_v60 = vperm.slane %v1029_v36, 4  ;;  %v494_v61 = vperm.slane %v1032_v37, 4  ;;  %v1095_v52 = vld [vmem:[%s1017_s11 + $0x8] sm:$0xff] }
  0x18   : > { %v442_v62 = vsub.f32 %v436_v54, %v440_v55  ;;  %v470_v63 = vsub.f32 %v464_v56, %v468_v57  ;;  %v1374_v46 = vperm.slane %v1029_v36, 5  ;;  %v522_v12 = vperm.slane %v1032_v37, 5 }
  0x19   : > { %v416_v48 = vadd.f32 %v414_v59, %v386_v58  ;;  %v492_v18 = vmul.f32 %v1372_v60, %v484_v19  ;;  %v496_v50 = vmul.f32 %v494_v61, %v1373_v24  ;;  %v1376_v51 = vperm.slane %v1029_v36, 6 }
  0x1a   : > { %v520_v53 = vmul.f32 %v1374_v46, %v512_v25  ;;  %v524_v54 = vmul.f32 %v522_v12, %v1375_v26  ;;  %v550_v55 = vperm.slane %v1032_v37, 6  ;;  %v1377_v56 = vperm.slane %v1029_v36, 7 }
  0x1b   : > { %v444_v57 = vadd.f32 %v442_v62, %v416_v48  ;;  %v498_v58 = vsub.f32 %v492_v18, %v496_v50  ;;  %v548_v59 = vmul.f32 %v1376_v51, %v540_v31  ;;  %v578_v60 = vperm.slane %v1032_v37, 7 }
  0x1c   : > { %v526_v24 = vsub.f32 %v520_v53, %v524_v54  ;;  %v552_v46 = vmul.f32 %v550_v55, %v544_v32  ;;  %v576_v26 = vmul.f32 %v1377_v56, %v1378_v33  ;;  %v1380_v18 = vperm.slane %v1083_v47, 0 }
  0x1d   : > { %v472_v48 = vadd.f32 %v470_v63, %v444_v57  ;;  %v580_v62 = vmul.f32 %v578_v60, %v1379_v38  ;;  %v383_v50 = vperm.slane %v1095_v52, 0  ;;  %v1382_v53 = vperm.slane %v1083_v47, 1 }
  0x1e   : > { %v554_v54 = vsub.f32 %v548_v59, %v552_v46  ;;  %v381_v51 = vmul.f32 %v1380_v18, %v374_v9  ;;  %v1387_v56 = vperm.slane %v1095_v52, 1  ;;  %v1385_v33 = vperm.slane %v1083_v47, 2 }
  0x1f   : > { %v500_v63 = vadd.f32 %v498_v58, %v472_v48  ;;  %v582_v57 = vsub.f32 %v576_v26, %v580_v62  ;;  %v385_v38 = vmul.f32 %v383_v50, %v1381_v16  ;;  %v409_v46 = vmul.f32 %v1382_v53, %v1383_v23 }
  0x20   : > { %v413_v59 = vmul.f32 %v1387_v56, %v1384_v30  ;;  %v437_v26 = vmul.f32 %v1385_v33, %v1386_v35  ;;  %v439_v58 = vperm.slane %v1095_v52, 2  ;;  %v1388_v48 = vperm.slane %v1083_v47, 3 }
  0x21   : > { %v528_v62 = vadd.f32 %v526_v24, %v500_v63  ;;  %v387_v18 = vsub.f32 %v381_v51, %v385_v38  ;;  %v1390_v16 = vperm.slane %v1095_v52, 3  ;;  %v485_v53 = vunpack.c.h.bf16 %v964_v15 }
  0x22   : > { %v415_v23 = vsub.f32 %v409_v46, %v413_v59  ;;  %v441_v30 = vmul.f32 %v439_v58, %v433_v39  ;;  %v465_v33 = vmul.f32 %v1388_v48, %v1391_v40  ;;  %v489_v35 = vunpack.c.h.bf16 %v973_v20 }
  0x23   : > { %v556_v56 = vadd.f32 %v554_v54, %v528_v62  ;;  %v469_v24 = vmul.f32 %v1390_v16, %v1389_v41  ;;  %v1396_v38 = vperm.slane %v1083_v47, 4  ;;  %v495_v51 = vperm.slane %v1095_v52, 4 }
  0x24   : > { %v417_v63 = vadd.f32 %v415_v23, %v387_v18  ;;  %v443_v46 = vsub.f32 %v437_v26, %v441_v30  ;;  %v1393_v59 = vunpack.c.h.bf16 %v978_v21  ;;  %v1394_v54 = vunpack.c.h.bf16 %v983_v22 }
  0x25   : > { %v584_v62 = vadd.f32 %v582_v57, %v556_v56  ;;  %v471_v48 = vsub.f32 %v465_v33, %v469_v24  ;;  %v493_v41 = vmul.f32 %v1396_v38, %v485_v53  ;;  %v497_v16 = vmul.f32 %v495_v51, %v489_v35 }
  0x26   : > { %v445_v40 = vadd.f32 %v443_v46, %v417_v63  ;;  %v1392_v23 = vperm.slane %v1083_v47, 5  ;;  %v1395_v30 = vperm.slane %v1095_v52, 5  ;;  %v541_v18 = vunpack.c.h.bf16 %v994_v27 }
  0x27   : > { %594 = vst [vmem:[%s1172_s16] sm:$0xff] %v584_v62  ;;  %v499_v56 = vsub.f32 %v493_v41, %v497_v16  ;;  %v1398_v33 = vunpack.c.h.bf16 %v999_v28  ;;  %v1397_v57 = vperm.slane %v1083_v47, 6  ;;  %v551_v26 = vperm.slane %v1095_v52, 6 }
  0x28   : > { %v473_v24 = vadd.f32 %v471_v48, %v445_v40  ;;  %v521_v63 = vmul.f32 %v1392_v23, %v1393_v59  ;;  %v525_v46 = vmul.f32 %v1395_v30, %v1394_v54  ;;  %v569_v62 = vunpack.c.h.bf16 %v1004_v29 }
  0x29   : > { %v549_v16 = vmul.f32 %v1397_v57, %v541_v18  ;;  %v553_v40 = vmul.f32 %v551_v26, %v1398_v33  ;;  %v573_v41 = vunpack.c.h.bf16 %v1025_v34  ;;  %v575_v48 = vperm.slane %v1083_v47, 7 }
  0x2a   : > { %v501_v23 = vadd.f32 %v499_v56, %v473_v24  ;;  %v527_v59 = vsub.f32 %v521_v63, %v525_v46  ;;  %v579_v54 = vperm.slane %v1095_v52, 7  ;;  %v390_v30 = vmul.f32 %v382_v43, %v373_v3 }
  0x2b   : > { %v555_v38 = vsub.f32 %v549_v16, %v553_v40  ;;  %v577_v57 = vmul.f32 %v575_v48, %v569_v62  ;;  %v392_v33 = vmul.f32 %v378_v42, %v376_v4  ;;  %v418_v56 = vmul.f32 %v410_v45, %v400_v5 }
  0x2c   : > { %v529_v24 = vadd.f32 %v527_v59, %v501_v23  ;;  %v581_v3 = vmul.f32 %v579_v54, %v573_v41  ;;  %v420_v43 = vmul.f32 %v406_v44, %v404_v10  ;;  %v1399_v4 = vperm.slane %v1032_v37, 2 }
  0x2d   : > { %v394_v63 = vadd.f32 %v392_v33, %v390_v30  ;;  %v1400_v46 = vunpack.c.l.bf16 %v945_v8  ;;  %v1401_v5 = vperm.slane %v1029_v36, 2  ;;  %v474_v59 = vmul.f32 %v466_v49, %v456_v17 }
  0x2e   : > { %v446_v42 = vmul.f32 %v1399_v4, %v428_v11  ;;  %v1402_v23 = vunpack.c.l.bf16 %v959_v14  ;;  %v1403_v10 = vperm.slane %v1029_v36, 3  ;;  %v557_v16 = vadd.f32 %v555_v38, %v529_v24 }
  0x2f   : > { %v448_v45 = vmul.f32 %v1401_v5, %v1400_v46  ;;  %v583_v40 = vsub.f32 %v577_v57, %v581_v3  ;;  %v422_v11 = vadd.f32 %v420_v43, %v418_v56  ;;  %v502_v30 = vmul.f32 %v494_v61, %v484_v19 }
  0x30   : > { %v476_v44 = vmul.f32 %v1403_v10, %v1402_v23  ;;  %v1404_v4 = vunpack.c.l.bf16 %v973_v20  ;;  %v1405_v46 = vperm.slane %v1029_v36, 4  ;;  %v530_v49 = vmul.f32 %v522_v12, %v512_v25 }
  0x31   : > { %v450_v33 = vadd.f32 %v448_v45, %v446_v42  ;;  %v585_v5 = vadd.f32 %v583_v40, %v557_v16  ;;  %v424_v38 = vadd.f32 %v422_v11, %v394_v63  ;;  %v1406_v56 = vunpack.c.l.bf16 %v983_v22 }
  0x32   : > { %v504_v17 = vmul.f32 %v1405_v46, %v1404_v4  ;;  %v478_v57 = vadd.f32 %v476_v44, %v474_v59  ;;  %v1407_v24 = vperm.slane %v1029_v36, 5  ;;  %v558_v61 = vmul.f32 %v550_v55, %v540_v31 }
  0x33   : > { %v1408_v43 = vperm.slane %v1029_v36, 6  ;;  %595 = vst [vmem:[%s1172_s16 + $0x8] sm:$0xff] %v585_v5  ;;  %v452_v12 = vadd.f32 %v450_v33, %v424_v38  ;;  %v1409_v25 = vunpack.c.l.bf16 %v1004_v29  ;;  %v391_v45 = vmul.f32 %v383_v50, %v374_v9 }
  0x34   : > { %v532_v3 = vmul.f32 %v1407_v24, %v1406_v56  ;;  %v506_v19 = vadd.f32 %v504_v17, %v502_v30  ;;  %v1410_v59 = vunpack.c.h.bf16 %v922_v1  ;;  %v1411_v31 = vperm.slane %v1083_v47, 0 }
  0x35   : > { %v560_v42 = vmul.f32 %v1408_v43, %v544_v32  ;;  %v586_v63 = vmul.f32 %v578_v60, %v1409_v25  ;;  %v1412_v32 = vunpack.c.l.bf16 %v1025_v34  ;;  %v1413_v10 = vperm.slane %v1029_v36, 7 }
  0x36   : > { %v393_v55 = vmul.f32 %v1411_v31, %v1410_v59  ;;  %v534_v23 = vadd.f32 %v532_v3, %v530_v49  ;;  %v1414_v16 = vunpack.c.h.bf16 %v927_v2  ;;  %v1415_v37 = vperm.slane %v1095_v52, 1 }
  0x37   : > { %v588_v44 = vmul.f32 %v1413_v10, %v1412_v32  ;;  %v1416_v0 = vunpack.c.h.bf16 %v935_v6  ;;  %v1417_v9 = vperm.slane %v1083_v47, 1  ;;  %v480_v1 = vadd.f32 %v478_v57, %v452_v12 }
  0x38   : > { %v419_v60 = vmul.f32 %v1415_v37, %v1414_v16  ;;  %v395_v40 = vadd.f32 %v393_v55, %v391_v45  ;;  %v1418_v11 = vunpack.c.h.bf16 %v940_v7  ;;  %v1419_v36 = vperm.slane %v1083_v47, 2 }
  0x39   : > { %v421_v50 = vmul.f32 %v1417_v9, %v1416_v0  ;;  %v1420_v4 = vunpack.c.h.bf16 %v954_v13  ;;  %v1421_v6 = vperm.slane %v1095_v52, 3  ;;  %v1422_v17 = vunpack.c.h.bf16 %v959_v14 }
  0x3a   : > { %v447_v30 = vmul.f32 %v439_v58, %v1418_v11  ;;  %v449_v2 = vmul.f32 %v1419_v36, %v433_v39  ;;  %v1423_v49 = vperm.slane %v1083_v47, 3  ;;  %v503_v7 = vmul.f32 %v495_v51, %v485_v53 }
  0x3b   : > { %v423_v33 = vadd.f32 %v421_v50, %v419_v60  ;;  %v475_v46 = vmul.f32 %v1421_v6, %v1420_v4  ;;  %v508_v8 = vadd.f32 %v506_v19, %v480_v1  ;;  %v562_v58 = vadd.f32 %v560_v42, %v558_v61 }
  0x3c   : > { %v477_v5 = vmul.f32 %v1423_v49, %v1422_v17  ;;  %v451_v39 = vadd.f32 %v449_v2, %v447_v30  ;;  %v1424_v13 = vperm.slane %v1083_v47, 4  ;;  %v1425_v14 = vunpack.c.h.bf16 %v978_v21 }
  0x3d   : > { %v425_v57 = vadd.f32 %v423_v33, %v395_v40  ;;  %v1426_v24 = vperm.slane %v1095_v52, 5  ;;  %v1427_v15 = vunpack.c.h.bf16 %v983_v22  ;;  %v1428_v53 = vperm.slane %v1083_v47, 5 }
  0x3e   : > { %v505_v38 = vmul.f32 %v1424_v13, %v489_v35  ;;  %v479_v56 = vadd.f32 %v477_v5, %v475_v46  ;;  %v536_v19 = vadd.f32 %v534_v23, %v508_v8  ;;  %v590_v61 = vadd.f32 %v588_v44, %v586_v63 }
  0x3f   : > { %v531_v3 = vmul.f32 %v1426_v24, %v1425_v14  ;;  %v533_v51 = vmul.f32 %v1428_v53, %v1427_v15  ;;  %v453_v43 = vadd.f32 %v451_v39, %v425_v57  ;;  %v559_v20 = vmul.f32 %v551_v26, %v541_v18 }
  0x40   : > { %v507_v42 = vadd.f32 %v505_v38, %v503_v7  ;;  %v1429_v35 = vunpack.c.h.bf16 %v999_v28  ;;  %v1430_v21 = vperm.slane %v1083_v47, 6  ;;  %v564_v25 = vadd.f32 %v562_v58, %v536_v19 }
  0x41   : > { %v481_v22 = vadd.f32 %v479_v56, %v453_v43  ;;  %v535_v45 = vadd.f32 %v533_v51, %v531_v3  ;;  %v587_v27 = vmul.f32 %v579_v54, %v569_v62  ;;  %v589_v28 = vmul.f32 %v575_v48, %v573_v41 }
  0x42   : > { %v561_v12 = vmul.f32 %v1430_v21, %v1429_v35  ;;  %v592_v18 = vadd.f32 %v590_v61, %v564_v25 }
  0x43   : > { %v509_v26 = vadd.f32 %v507_v42, %v481_v22  ;;  %v591_v31 = vadd.f32 %v589_v28, %v587_v27 }
  0x44   : > { %v563_v63 = vadd.f32 %v561_v12, %v559_v20  ;;  %596 = vst [vmem:[%s366_s23] sm:$0xff] %v592_v18 }
  0x45   : > { %v537_v59 = vadd.f32 %v535_v45, %v509_v26 }
  0x47   : > { %v565_v55 = vadd.f32 %v563_v63, %v537_v59 }
  0x49   : > { %v593_v23 = vadd.f32 %v591_v31, %v565_v55 }
  0x4b   : > { %597 = vst [vmem:[%s366_s23 + $0x8] sm:$0xff] %v593_v23 }
  0x4c PF: > { %s16_s20 = sadd.s32 1, %s864_s20   ;;  %s1431_s18 = smov %s860_s19 }
  0x4d   : > { %p13_p5 = scmp.ge.s32.totalorder %s16_s20, 4   ;;  %s1432_s19 = smov %s1434_s21 }
  0x4f   :  { %15 = sbr.rel (!%p13_p5) target bundleno = 2 (0x2), region = 101 }

// kernel: reverse.6
= control target key start
LH: loop header
LB: loop body
LE: loop exit
PB: predicated region body
PF: predicated region fallthrough
CT: control target
= control target key end

     0   :  { %s584_s0 = inlined_call_operand.vmem [shape: f32[8,2,8,8,3], index: 0, kind: input, shape index: {}]   ;;  %s585_s1 = inlined_call_operand.vmem [shape: f32[8,2,8,8,3], index: 1, kind: output, shape index: {}]  }
   0x1   :  { %v192_v0 = vld [vmem:[%s584_s0 + $0x10] sm:$0xff]  ;;  %v193_v1 = vld [vmem:[%s584_s0 + $0x40] sm:$0xff]  ;;  %v207_v8 = vld [vmem:[%s584_s0 + $0x28] sm:$0xff] }
   0x2   :  { %v195_v2 = vld [vmem:[%s584_s0 + $0x70] sm:$0xff]  ;;  %4 = vst [vmem:[%s585_s1] sm:$0xff] %v192_v0  ;;  %v197_v3 = vld [vmem:[%s584_s0 + $0xa0] sm:$0xff]  ;;  %v209_v9 = vld [vmem:[%s584_s0 + $0x58] sm:$0xff] }
   0x3   :  { %194 = vst [vmem:[%s585_s1 + $0x30] sm:$0xff] %v193_v1  ;;  %v199_v4 = vld [vmem:[%s584_s0 + $0xd0] sm:$0xff]  ;;  %v201_v5 = vld [vmem:[%s584_s0 + $0x100] sm:$0xff]  ;;  %v211_v10 = vld [vmem:[%s584_s0 + $0x88] sm:$0xff] }
   0x4   :  { %196 = vst [vmem:[%s585_s1 + $0x60] sm:$0xff] %v195_v2  ;;  %v203_v6 = vld [vmem:[%s584_s0 + $0x130] sm:$0xff]  ;;  %v205_v7 = vld [vmem:[%s584_s0 + $0x160] sm:$0xff]  ;;  %v213_v11 = vld [vmem:[%s584_s0 + $0xb8] sm:$0xff] }
   0x5   :  { %198 = vst [vmem:[%s585_s1 + $0x90] sm:$0xff] %v197_v3  ;;  %v215_v12 = vld [vmem:[%s584_s0 + $0xe8] sm:$0xff]  ;;  %v217_v13 = vld [vmem:[%s584_s0 + $0x118] sm:$0xff]  ;;  %v239_v24 = vld [vmem:[%s584_s0 + $0x20] sm:$0xff] }
   0x6   :  { %200 = vst [vmem:[%s585_s1 + $0xc0] sm:$0xff] %v199_v4  ;;  %v219_v14 = vld [vmem:[%s584_s0 + $0x148] sm:$0xff]  ;;  %v221_v15 = vld [vmem:[%s584_s0 + $0x178] sm:$0xff]  ;;  %v241_v25 = vld [vmem:[%s584_s0 + $0x50] sm:$0xff] }
   0x7   :  { %202 = vst [vmem:[%s585_s1 + $0xf0] sm:$0xff] %v201_v5  ;;  %v223_v16 = vld [vmem:[%s584_s0 + $0x8] sm:$0xff]  ;;  %v225_v17 = vld [vmem:[%s584_s0 + $0x38] sm:$0xff]  ;;  %v243_v26 = vld [vmem:[%s584_s0 + $0x80] sm:$0xff] }
   0x8   :  { %204 = vst [vmem:[%s585_s1 + $0x120] sm:$0xff] %v203_v6  ;;  %v227_v18 = vld [vmem:[%s584_s0 + $0x68] sm:$0xff]  ;;  %v229_v19 = vld [vmem:[%s584_s0 + $0x98] sm:$0xff]  ;;  %v245_v27 = vld [vmem:[%s584_s0 + $0xb0] sm:$0xff] }
   0x9   :  { %206 = vst [vmem:[%s585_s1 + $0x150] sm:$0xff] %v205_v7  ;;  %v231_v20 = vld [vmem:[%s584_s0 + $0xc8] sm:$0xff]  ;;  %v233_v21 = vld [vmem:[%s584_s0 + $0xf8] sm:$0xff]  ;;  %v247_v28 = vld [vmem:[%s584_s0 + $0xe0] sm:$0xff] }
   0xa   :  { %208 = vst [vmem:[%s585_s1 + $0x18] sm:$0xff] %v207_v8  ;;  %v235_v22 = vld [vmem:[%s584_s0 + $0x128] sm:$0xff]  ;;  %v237_v23 = vld [vmem:[%s584_s0 + $0x158] sm:$0xff]  ;;  %v249_v29 = vld [vmem:[%s584_s0 + $0x110] sm:$0xff] }
   0xb   :  { %210 = vst [vmem:[%s585_s1 + $0x48] sm:$0xff] %v209_v9  ;;  %v251_v30 = vld [vmem:[%s584_s0 + $0x140] sm:$0xff]  ;;  %v253_v31 = vld [vmem:[%s584_s0 + $0x170] sm:$0xff]  ;;  %v270_v40 = vld [vmem:[%s584_s0 + $0x18] sm:$0xff] }
   0xc   :  { %212 = vst [vmem:[%s585_s1 + $0x78] sm:$0xff] %v211_v10  ;;  %v129_v32 = vld [vmem:[%s584_s0] sm:$0xff]  ;;  %v256_v33 = vld [vmem:[%s584_s0 + $0x30] sm:$0xff]  ;;  %v272_v41 = vld [vmem:[%s584_s0 + $0x48] sm:$0xff] }
   0xd   :  { %214 = vst [vmem:[%s585_s1 + $0xa8] sm:$0xff] %v213_v11  ;;  %v258_v34 = vld [vmem:[%s584_s0 + $0x60] sm:$0xff]  ;;  %v260_v35 = vld [vmem:[%s584_s0 + $0x90] sm:$0xff]  ;;  %v274_v42 = vld [vmem:[%s584_s0 + $0x78] sm:$0xff] }
   0xe   :  { %216 = vst [vmem:[%s585_s1 + $0xd8] sm:$0xff] %v215_v12  ;;  %v262_v36 = vld [vmem:[%s584_s0 + $0xc0] sm:$0xff]  ;;  %v264_v37 = vld [vmem:[%s584_s0 + $0xf0] sm:$0xff]  ;;  %v276_v43 = vld [vmem:[%s584_s0 + $0xa8] sm:$0xff] }
   0xf   :  { %218 = vst [vmem:[%s585_s1 + $0x108] sm:$0xff] %v217_v13  ;;  %v266_v38 = vld [vmem:[%s584_s0 + $0x120] sm:$0xff]  ;;  %v268_v39 = vld [vmem:[%s584_s0 + $0x150] sm:$0xff]  ;;  %v278_v44 = vld [vmem:[%s584_s0 + $0xd8] sm:$0xff] }
  0x10   :  { %220 = vst [vmem:[%s585_s1 + $0x138] sm:$0xff] %v219_v14  ;;  %v280_v45 = vld [vmem:[%s584_s0 + $0x108] sm:$0xff]  ;;  %v282_v46 = vld [vmem:[%s584_s0 + $0x138] sm:$0xff] }
  0x11   :  { %222 = vst [vmem:[%s585_s1 + $0x168] sm:$0xff] %v221_v15  ;;  %v284_v47 = vld [vmem:[%s584_s0 + $0x168] sm:$0xff] }
  0x12   :  { %224 = vst [vmem:[%s585_s1 + $0x8] sm:$0xff] %v223_v16 }
  0x13   :  { %226 = vst [vmem:[%s585_s1 + $0x38] sm:$0xff] %v225_v17 }
  0x14   :  { %228 = vst [vmem:[%s585_s1 + $0x68] sm:$0xff] %v227_v18 }
  0x15   :  { %230 = vst [vmem:[%s585_s1 + $0x98] sm:$0xff] %v229_v19 }
  0x16   :  { %232 = vst [vmem:[%s585_s1 + $0xc8] sm:$0xff] %v231_v20 }
  0x17   :  { %234 = vst [vmem:[%s585_s1 + $0xf8] sm:$0xff] %v233_v21 }
  0x18   :  { %236 = vst [vmem:[%s585_s1 + $0x128] sm:$0xff] %v235_v22 }
  0x19   :  { %238 = vst [vmem:[%s585_s1 + $0x158] sm:$0xff] %v237_v23 }
  0x1a   :  { %240 = vst [vmem:[%s585_s1 + $0x20] sm:$0xff] %v239_v24 }
  0x1b   :  { %242 = vst [vmem:[%s585_s1 + $0x50] sm:$0xff] %v241_v25 }
  0x1c   :  { %244 = vst [vmem:[%s585_s1 + $0x80] sm:$0xff] %v243_v26 }
  0x1d   :  { %246 = vst [vmem:[%s585_s1 + $0xb0] sm:$0xff] %v245_v27 }
  0x1e   :  { %248 = vst [vmem:[%s585_s1 + $0xe0] sm:$0xff] %v247_v28 }
  0x1f   :  { %250 = vst [vmem:[%s585_s1 + $0x110] sm:$0xff] %v249_v29 }
  0x20   :  { %252 = vst [vmem:[%s585_s1 + $0x140] sm:$0xff] %v251_v30 }
  0x21   :  { %254 = vst [vmem:[%s585_s1 + $0x170] sm:$0xff] %v253_v31 }
  0x22   :  { %255 = vst [vmem:[%s585_s1 + $0x10] sm:$0xff] %v129_v32 }
  0x23   :  { %257 = vst [vmem:[%s585_s1 + $0x40] sm:$0xff] %v256_v33 }
  0x24   :  { %259 = vst [vmem:[%s585_s1 + $0x70] sm:$0xff] %v258_v34 }
  0x25   :  { %261 = vst [vmem:[%s585_s1 + $0xa0] sm:$0xff] %v260_v35 }
  0x26   :  { %263 = vst [vmem:[%s585_s1 + $0xd0] sm:$0xff] %v262_v36 }
  0x27   :  { %265 = vst [vmem:[%s585_s1 + $0x100] sm:$0xff] %v264_v37 }
  0x28   :  { %267 = vst [vmem:[%s585_s1 + $0x130] sm:$0xff] %v266_v38 }
  0x29   :  { %269 = vst [vmem:[%s585_s1 + $0x160] sm:$0xff] %v268_v39 }
  0x2a   :  { %271 = vst [vmem:[%s585_s1 + $0x28] sm:$0xff] %v270_v40 }
  0x2b   :  { %273 = vst [vmem:[%s585_s1 + $0x58] sm:$0xff] %v272_v41 }
  0x2c   :  { %275 = vst [vmem:[%s585_s1 + $0x88] sm:$0xff] %v274_v42 }
  0x2d   :  { %277 = vst [vmem:[%s585_s1 + $0xb8] sm:$0xff] %v276_v43 }
  0x2e   :  { %279 = vst [vmem:[%s585_s1 + $0xe8] sm:$0xff] %v278_v44 }
  0x2f   :  { %281 = vst [vmem:[%s585_s1 + $0x118] sm:$0xff] %v280_v45 }
  0x30   :  { %283 = vst [vmem:[%s585_s1 + $0x148] sm:$0xff] %v282_v46 }
  0x31   :  { %285 = vst [vmem:[%s585_s1 + $0x178] sm:$0xff] %v284_v47 }

// kernel: fnn3d_forward.9
= control target key start
LH: loop header
LB: loop body
LE: loop exit
PB: predicated region body
PF: predicated region fallthrough
CT: control target
= control target key end

     0   :  { %s626_s15 = smov 0   ;;  %s713_s0 = inlined_call_operand.vmem [shape: f32[8,1024], index: 0, kind: input, shape index: {}]   ;;  %s714_s1 = inlined_call_operand.vmem [shape: f32[8,8], index: 1, kind: input, shape index: {}]   ;;  %s715_s2 = inlined_call_operand.vmem [shape: f32[8,1], index: 2, kind: input, shape index: {}]   ;;  %s716_s3 = inlined_call_operand.vmem [shape: f32[8,1024], index: 3, kind: input, shape index: {}, may-alias: {3,4}]   ;;  %s717_s4 = inlined_call_operand.vmem [shape: f32[8,1024], index: 4, kind: output, shape index: {}, may-alias: {3,4}]  }
   0x1 LB: > { %s549_s16 = sadd.s32 4294967295, %s598_s15   ;;  %p553_p0 = scmp.ge.s32.totalorder %s598_s15, 1  ;;  %s598_s15 = sphi %s626_s15, %s14_s15  }
   0x2   : > { %p174_p1 = scmp.lt.s32.totalorder %s598_s15, 3 }
   0x4   : > { %p175_p2 = pnand %p553_p0, %p174_p1 }
   0x5   : > { %s554_s17 = sshll.u32 (!%p175_p2), %s549_s16, 2 }
   0x6   : > { %178 = sbr.rel (%p175_p2) target bundleno = 214 (0xd6), region = 36  ;;  %p206_p3 = scmp.lt.s32.totalorder (!%p175_p2), %s554_s17, 7 }
   0xb   : > { %v234_v0 = vld [vmem:[%s715_s2] sm:$0xff]  ;;  %v600_v1 = vmov 0   ;;  %s719_s17 = smov (!%p206_p3, %s554_s17), 7  ;;  %vm244_vm0 = vcmask 1043456   ;;  %vm240_vm1 = vcmask 64512  }
   0xc   : > { %575 = vset.pattern.permute.xlu0 %v600_v1  ;;  %s637_s20 = sshll.u32 %s719_s17, 3  ;;  %v224_v2 = vld [vmem:[%s714_s1] sm:$0xff] }
   0xd   : > { %237 = vperm.xlu0 %575, %v234_v0   ;;  %s209_s23 = scalar_lea.vmem %s713_s0, %s637_s20  ;;  %v225_v14 = vpack.c.bf16 %v224_v2, %v224_v2  ;;  %s215_s28 = scalar_lea.vmem %s716_s3, %s637_s20 }
   0xe   : > { %v226_v3 = vld [vmem:[%s209_s23] sm:$0xff]  ;;  %v227_v4 = vld [vmem:[%s209_s23 + $0x8] sm:$0xff]  ;;  %v228_v5 = vld [vmem:[%s209_s23 + $0x10] sm:$0xff]  ;;  %s221_s5 = scalar_lea.vmem %s717_s4, %s637_s20 }
   0xf   : > { %v230_v6 = vpack.c.bf16 %v226_v3, %v226_v3  ;;  %v231_v7 = vpack.c.bf16 %v227_v4, %v227_v4  ;;  %v232_v8 = vpack.c.bf16 %v228_v5, %v228_v5  ;;  %v229_v9 = vld [vmem:[%s209_s23 + $0x18] sm:$0xff]  ;;  %v309_v18 = vld [vmem:[%s215_s28] sm:$0xff]  ;;  %v310_v20 = vld [vmem:[%s215_s28 + $0x8] sm:$0xff] }
  0x10   : > { %v233_v10 = vpack.c.bf16 %v229_v9, %v229_v9  ;;  %v311_v30 = vld [vmem:[%s215_s28 + $0x10] sm:$0xff]  ;;  %v312_v32 = vld [vmem:[%s215_s28 + $0x18] sm:$0xff] }
  0x11   : > { %v246_v11 = vsel %vm244_vm0, %v230_v6, 0  ;;  %v249_v12 = vsel %vm244_vm0, %v231_v7, 0  ;;  %v252_v13 = vsel %vm244_vm0, %v232_v8, 0 }
  0x12   : > { %264 = vmatpush.bf16.msra.mxu0 %v246_v11  ;;  %277 = vmatpush.bf16.msra.mxu1 %v249_v12  ;;  %v255_v15 = vsel %vm244_vm0, %v233_v10, 0 }
  0x13   : > { %290 = vmatpush.bf16.msra.mxu2 %v252_v13  ;;  %303 = vmatpush.bf16.msra.mxu3 %v255_v15 }
  0x15   : > { %560 = vmatmul.msk.bf16.vlgmr.msra.gmra.mxu0 %vm240_vm1, %v225_v14  ;;  %561 = vmatmul.msk.bf16.vlgmr.msra.gmra.mxu1 %vm240_vm1, %v225_v14 }
  0x16   : > { %562 = vmatmul.msk.bf16.vlgmr.msra.gmra.mxu2 %vm240_vm1, %v225_v14  ;;  %563 = vmatmul.msk.bf16.vlgmr.msra.gmra.mxu3 %vm240_vm1, %v225_v14 }
  0x7f   : > { %v238_v16 = vpop.permute.xlu0 %237 }
  0x92   : > { %v266_v17 = vpop.f32.mrf.mxu0  ;;  %v279_v19 = vpop.f32.mrf.mxu1 }
  0x93   : > { %v267_v21 = vadd.f32 %v266_v17, %v238_v16  ;;  %v280_v22 = vadd.f32 %v279_v19, %v238_v16 }
  0x95   : > { %v650_v23 = vadd.f32 %v309_v18, %v267_v21  ;;  %v652_v24 = vadd.f32 %v310_v20, %v280_v22 }
  0x97   : > { %v655_v25 = vmul.f32 0.70710677, %v650_v23  ;;  %v658_v26 = vmul.f32 0.70710677, %v652_v24 }
  0x99   : > { %v325_v27 = vand.u32 2147483647, %v655_v25  ;;  %v326_v28 = vand.u32 2147483647, %v658_v26  ;;  %v292_v29 = vpop.f32.mrf.mxu2  ;;  %v305_v31 = vpop.f32.mrf.mxu3 }
  0x9a   : > { %v293_v33 = vadd.f32 %v292_v29, %v238_v16  ;;  %v306_v34 = vadd.f32 %v305_v31, %v238_v16  ;;  %v268_v35 = vpop.f32.mrf.mxu0  ;;  %v281_v36 = vpop.f32.mrf.mxu1 }
  0x9b   : > { %v329_v37 = vmul.f32 0.3275911, %v325_v27  ;;  %v330_v38 = vmul.f32 0.3275911, %v326_v28  ;;  %v433_v58 = vsub.f32 0.0, %v325_v27  ;;  %v434_v61 = vsub.f32 0.0, %v326_v28 }
  0x9c   : > { %v662_v39 = vadd.f32 %v311_v30, %v293_v33  ;;  %v664_v40 = vadd.f32 %v312_v32, %v306_v34 }
  0x9d   : > { %v333_v41 = vadd.f32 1.0, %v329_v37  ;;  %v334_v42 = vadd.f32 1.0, %v330_v38  ;;  %v437_v4 = vmul.f32 %v433_v58, %v325_v27  ;;  %v438_v7 = vmul.f32 %v434_v61, %v326_v28 }
  0x9e   : > { %v667_v43 = vmul.f32 0.70710677, %v662_v39  ;;  %v670_v44 = vmul.f32 0.70710677, %v664_v40 }
  0x9f   : > { %576 = vrcp.f32 %v333_v41  ;;  %v348_v59 = vand.u32 2147483648, %v333_v41  ;;  %v346_v63 = vand.u32 2147483647, %v333_v41  ;;  %v363_v0 = vand.u32 2147483648, %v334_v42 }
  0xa0   : > { %578 = vrcp.f32 %v334_v42  ;;  %v673_v47 = vand.u32 2147483647, %v667_v43  ;;  %v676_v48 = vand.u32 2147483647, %v670_v44  ;;  %v361_v2 = vand.u32 2147483647, %v334_v42 }
  0xa1   : > { %v294_v45 = vpop.f32.mrf.mxu2  ;;  %v307_v46 = vpop.f32.mrf.mxu3  ;;  %vm342_vm4 = vweird.f32 %v333_v41  ;;  %v349_v5 = vor.u32 1.1754944e-38, %v348_v59  ;;  %vm357_vm6 = vweird.f32 %v334_v42  ;;  %vm347_vm7 = vcmp.eq.f32.partialorder %v346_v63, 8.507059e+37 }
  0xa2   : > { %v331_v49 = vmul.f32 0.3275911, %v673_v47  ;;  %v332_v51 = vmul.f32 0.3275911, %v676_v48  ;;  %v364_v10 = vor.u32 1.1754944e-38, %v363_v0  ;;  %vm362_vm9 = vcmp.eq.f32.partialorder %v361_v2, 8.507059e+37 }
  0xa3   : > { %v441_v16 = vmul.f32 1.442695, %v437_v4  ;;  %v443_v20 = vmul.f32 1.442695, %v438_v7  ;;  %v435_v38 = vsub.f32 0.0, %v673_v47  ;;  %v436_v58 = vsub.f32 0.0, %v676_v48 }
  0xa4   : > { %v680_v54 = vadd.f32 1.0, %v331_v49  ;;  %v682_v56 = vadd.f32 1.0, %v332_v51 }
  0xa5   : > { %v577_v50 = vpop.eup %576  ;;  %v439_v63 = vmul.f32 %v435_v38, %v673_v47 }
  0xa6   : > { %v579_v52 = vpop.eup %578  ;;  %v338_v53 = vmul.f32 %v577_v50, %v333_v41  ;;  %580 = vrcp.f32 %v680_v54  ;;  %vm343_vm2 = vweird.f32 %v577_v50  ;;  %v376_v27 = vand.u32 2147483647, %v680_v54 }
  0xa7   : > { %v353_v55 = vmul.f32 %v579_v52, %v334_v42  ;;  %582 = vrcp.f32 %v682_v56  ;;  %vm358_vm3 = vweird.f32 %v579_v52  ;;  %vm344_vm5 = vmor %vm342_vm4, %vm343_vm2  ;;  %v378_v28 = vand.u32 2147483648, %v680_v54 }
  0xa8   : > { %v339_v57 = vsub.f32 1.0, %v338_v53  ;;  %vm359_vm8 = vmor %vm357_vm6, %vm358_vm3  ;;  %v393_v32 = vand.u32 2147483648, %v682_v56  ;;  %v391_v35 = vand.u32 2147483647, %v682_v56  ;;  %vm372_vm12 = vweird.f32 %v680_v54 }
  0xa9   : > { %v354_v60 = vsub.f32 1.0, %v353_v55  ;;  %v379_v42 = vor.u32 1.1754944e-38, %v378_v28  ;;  %vm387_vm14 = vweird.f32 %v682_v56  ;;  %vm377_vm15 = vcmp.eq.f32.partialorder %v376_v27, 8.507059e+37 }
  0xaa   : > { %v340_v62 = vmul.f32 %v577_v50, %v339_v57  ;;  %vm392_vm1 = vcmp.eq.f32.partialorder %v391_v35, 8.507059e+37  ;;  %584 = vpow2.f32 %v441_v16  ;;  %vm457_vm2 = vcmp.ge.f32.partialorder %v655_v25, 0.0 }
  0xab   : > { %v355_v1 = vmul.f32 %v579_v52, %v354_v60  ;;  %586 = vpow2.f32 %v443_v20  ;;  %vm458_vm3 = vcmp.ge.f32.partialorder %v658_v26, 0.0  ;;  %vm459_vm4 = vcmp.ge.f32.partialorder %v667_v43, 0.0 }
  0xac   : > { %v341_v3 = vadd.f32 %v577_v50, %v340_v62  ;;  %v581_v8 = vpop.eup %580 }
  0xad   : > { %v356_v6 = vadd.f32 %v579_v52, %v355_v1  ;;  %v583_v11 = vpop.eup %582  ;;  %v368_v14 = vmul.f32 %v581_v8, %v680_v54  ;;  %vm373_vm10 = vweird.f32 %v581_v8 }
  0xae   : > { %v345_v9 = vsel %vm344_vm5, %v577_v50, %v341_v3  ;;  %v383_v18 = vmul.f32 %v583_v11, %v682_v56  ;;  %vm388_vm11 = vweird.f32 %v583_v11  ;;  %vm374_vm13 = vmor %vm372_vm12, %vm373_vm10  ;;  %v394_v50 = vor.u32 1.1754944e-38, %v393_v32 }
  0xaf   : > { %v350_v12 = vsel %vm347_vm7, %v349_v5, %v345_v9  ;;  %v360_v13 = vsel %vm359_vm8, %v579_v52, %v356_v6  ;;  %v369_v21 = vsub.f32 1.0, %v368_v14  ;;  %vm389_vm0 = vmor %vm387_vm14, %vm388_vm11  ;;  %v440_v3 = vmul.f32 %v436_v58, %v676_v48 }
  0xb0   : > { %v397_v15 = vmul.f32 1.0614054, %v350_v12  ;;  %v365_v17 = vsel %vm362_vm9, %v364_v10, %v360_v13  ;;  %v384_v29 = vsub.f32 1.0, %v383_v18  ;;  %v445_v9 = vmul.f32 1.442695, %v439_v63 }
  0xb1   : > { %v398_v19 = vmul.f32 1.0614054, %v365_v17  ;;  %v370_v31 = vmul.f32 %v581_v8, %v369_v21  ;;  %v317_v32 = vmul.f32 0.5, %v650_v23  ;;  %vm460_vm5 = vcmp.ge.f32.partialorder %v670_v44, 0.0 }
  0xb2   : > { %v401_v22 = vadd.f32 -1.4531521, %v397_v15  ;;  %v385_v34 = vmul.f32 %v583_v11, %v384_v29  ;;  %v447_v15 = vmul.f32 1.442695, %v440_v3  ;;  %588 = vpow2.f32 %v445_v9 }
  0xb3   : > { %v402_v30 = vadd.f32 -1.4531521, %v398_v19  ;;  %v371_v37 = vadd.f32 %v581_v8, %v370_v31 }
  0xb4   : > { %v405_v33 = vmul.f32 %v401_v22, %v350_v12  ;;  %v386_v45 = vadd.f32 %v583_v11, %v385_v34  ;;  %590 = vpow2.f32 %v447_v15 }
  0xb5   : > { %v406_v36 = vmul.f32 %v402_v30, %v365_v17  ;;  %v375_v49 = vsel %vm374_vm13, %v581_v8, %v371_v37  ;;  %v318_v37 = vmul.f32 0.5, %v652_v24  ;;  %v319_v24 = vmul.f32 0.5, %v662_v39 }
  0xb6   : > { %v409_v41 = vadd.f32 1.4214138, %v405_v33  ;;  %v380_v52 = vsel %vm377_vm15, %v379_v42, %v375_v49  ;;  %v390_v53 = vsel %vm389_vm0, %v583_v11, %v386_v45  ;;  %v585_v11 = vpop.eup %584 }
  0xb7   : > { %v410_v46 = vadd.f32 1.4214138, %v406_v36  ;;  %v399_v57 = vmul.f32 1.0614054, %v380_v52  ;;  %v395_v54 = vsel %vm392_vm1, %v394_v50, %v390_v53  ;;  %v587_v16 = vpop.eup %586 }
  0xb8   : > { %v413_v51 = vmul.f32 %v409_v41, %v350_v12  ;;  %v400_v60 = vmul.f32 1.0614054, %v395_v54  ;;  %v589_v36 = vpop.eup %588 }
  0xb9   : > { %v414_v55 = vmul.f32 %v410_v46, %v365_v17  ;;  %v403_v62 = vadd.f32 -1.4531521, %v399_v57  ;;  %v320_v57 = vmul.f32 0.5, %v664_v40 }
  0xba   : > { %v417_v59 = vadd.f32 -0.28449672, %v413_v51  ;;  %v404_v0 = vadd.f32 -1.4531521, %v400_v60  ;;  %v591_v41 = vpop.eup %590 }
  0xbb   : > { %v418_v61 = vadd.f32 -0.28449672, %v414_v55  ;;  %v407_v2 = vmul.f32 %v403_v62, %v380_v52 }
  0xbc   : > { %v421_v56 = vmul.f32 %v417_v59, %v350_v12  ;;  %v408_v5 = vmul.f32 %v404_v0, %v395_v54 }
  0xbd   : > { %v422_v1 = vmul.f32 %v418_v61, %v365_v17  ;;  %v411_v7 = vadd.f32 1.4214138, %v407_v2 }
  0xbe   : > { %v425_v4 = vadd.f32 0.2548296, %v421_v56  ;;  %v412_v10 = vadd.f32 1.4214138, %v408_v5 }
  0xbf   : > { %v426_v6 = vadd.f32 0.2548296, %v422_v1  ;;  %v415_v14 = vmul.f32 %v411_v7, %v380_v52 }
  0xc0   : > { %v429_v8 = vmul.f32 %v425_v4, %v350_v12  ;;  %v416_v19 = vmul.f32 %v412_v10, %v395_v54 }
  0xc1   : > { %v430_v13 = vmul.f32 %v426_v6, %v365_v17  ;;  %v419_v20 = vadd.f32 -0.28449672, %v415_v14 }
  0xc2   : > { %v449_v18 = vmul.f32 %v585_v11, %v429_v8  ;;  %v420_v22 = vadd.f32 -0.28449672, %v416_v19 }
  0xc3   : > { %v450_v47 = vmul.f32 %v587_v16, %v430_v13  ;;  %v423_v27 = vmul.f32 %v419_v20, %v380_v52 }
  0xc4   : > { %v453_v21 = vsub.f32 1.0, %v449_v18  ;;  %v424_v12 = vmul.f32 %v420_v22, %v395_v54 }
  0xc5   : > { %v454_v48 = vsub.f32 1.0, %v450_v47  ;;  %v427_v17 = vadd.f32 0.2548296, %v423_v27 }
  0xc6   : > { %v461_v28 = vsub.f32 0.0, %v453_v21  ;;  %v428_v31 = vadd.f32 0.2548296, %v424_v12 }
  0xc7   : > { %v462_v29 = vsub.f32 0.0, %v454_v48  ;;  %v431_v35 = vmul.f32 %v427_v17, %v380_v52 }
  0xc8   : > { %v465_v30 = vsel %vm457_vm2, %v453_v21, %v461_v28  ;;  %v432_v25 = vmul.f32 %v428_v31, %v395_v54 }
  0xc9   : > { %v469_v33 = vadd.f32 1.0, %v465_v30  ;;  %v466_v34 = vsel %vm458_vm3, %v454_v48, %v462_v29  ;;  %v451_v45 = vmul.f32 %v589_v36, %v431_v35 }
  0xca   : > { %v470_v38 = vadd.f32 1.0, %v466_v34  ;;  %v452_v26 = vmul.f32 %v591_v41, %v432_v25 }
  0xcb   : > { %v473_v42 = vmul.f32 %v469_v33, %v317_v32  ;;  %v455_v49 = vsub.f32 1.0, %v451_v45 }
  0xcc   : > { %v474_v46 = vmul.f32 %v470_v38, %v318_v37  ;;  %v456_v23 = vsub.f32 1.0, %v452_v26 }
  0xcd   : > { %477 = vst [vmem:[%s221_s5] sm:$0xff] %v473_v42  ;;  %v463_v50 = vsub.f32 0.0, %v455_v49 }
  0xce   : > { %478 = vst [vmem:[%s221_s5 + $0x8] sm:$0xff] %v474_v46  ;;  %v464_v51 = vsub.f32 0.0, %v456_v23 }
  0xcf   : > { %v467_v52 = vsel %vm459_vm4, %v455_v49, %v463_v50 }
  0xd0   : > { %v471_v53 = vadd.f32 1.0, %v467_v52  ;;  %v468_v55 = vsel %vm460_vm5, %v456_v23, %v464_v51 }
  0xd1   : > { %v472_v54 = vadd.f32 1.0, %v468_v55 }
  0xd2   : > { %v475_v58 = vmul.f32 %v471_v53, %v319_v24 }
  0xd3   : > { %v476_v59 = vmul.f32 %v472_v54, %v320_v57 }
  0xd4   : > { %479 = vst [vmem:[%s221_s5 + $0x10] sm:$0xff] %v475_v58 }
  0xd5   : > { %480 = vst [vmem:[%s221_s5 + $0x18] sm:$0xff] %v476_v59 }
  0xd6 PF: > { %s14_s15 = sadd.s32 1, %s598_s15  }
  0xd7   : > { %p11_p4 = scmp.ge.s32.totalorder %s14_s15, 4  }
  0xd9   :  { %13 = sbr.rel (!%p11_p4) target bundleno = 1 (0x1), region = 69 }

// kernel: fnn3d_forward.13
= control target key start
LH: loop header
LB: loop body
LE: loop exit
PB: predicated region body
PF: predicated region fallthrough
CT: control target
= control target key end

     0   :  { %s1109_s29 = smov 0   ;;  %s1380_s0 = inlined_call_operand.vmem [shape: f32[8,1024], index: 0, kind: input, shape index: {}]   ;;  %s1381_s1 = inlined_call_operand.vmem [shape: f32[8,1024], index: 1, kind: input, shape index: {}]   ;;  %s1382_s2 = inlined_call_operand.vmem [shape: f32[8,8], index: 2, kind: input, shape index: {}]   ;;  %s1383_s3 = inlined_call_operand.vmem [shape: f32[8,1], index: 3, kind: input, shape index: {}]   ;;  %s1384_s4 = inlined_call_operand.vmem [shape: f32[16,8], index: 4, kind: input, shape index: {}]   ;;  %s1385_s5 = inlined_call_operand.vmem [shape: f32[16,1], index: 5, kind: input, shape index: {}]   ;;  %s1386_s6 = inlined_call_operand.vmem [shape: f32[1,16], index: 6, kind: input, shape index: {}]   ;;  %s1387_s7 = inlined_call_operand.<no memory space> [shape: f32[1,1], index: 7, kind: input, shape index: {}]   ;;  %s1388_s8 = inlined_call_operand.vmem [shape: f32[1,1024], index: 8, kind: output, shape index: {}]  }
   0x1   :  { %v13_v0 = vstv %s1387_s7 }
   0x2   :  { %14 = vst [vmem:[#allocation2] sm:$0x1] %v13_v0 }
   0x3 LB: > { %s985_s30 = sadd.s32 4294967295, %s1058_s29   ;;  %p989_p0 = scmp.ge.s32.totalorder %s1058_s29, 1  ;;  %s1058_s29 = sphi %s1109_s29, %s20_s29  }
   0x4   : > { %p276_p1 = scmp.lt.s32.totalorder %s1058_s29, 3 }
   0x6   : > { %p277_p2 = pnand %p989_p0, %p276_p1 }
   0x7   : > { %s990_s9 = sshll.u32 (!%p277_p2), %s985_s30, 2 }
   0x8   : > { %280 = sbr.rel (%p277_p2) target bundleno = 539 (0x21b), region = 52  ;;  %p315_p3 = scmp.lt.s32.totalorder (!%p277_p2), %s990_s9, 7 }
   0xd   : > { %v342_v1 = vld [vmem:[%s1383_s3] sm:$0xff]  ;;  %v1060_v2 = vmov 0   ;;  %s1390_s9 = smov (!%p315_p3, %s990_s9), 7  ;;  %vm352_vm0 = vcmask 1043456   ;;  %vm348_vm1 = vcmask 64512   ;;  %v433_v18 = vld [vmem:[%s1385_s5 + $0x8] sm:$0xff] }
   0xe   : > { %1018 = vset.pattern.permute.xlu0 %v1060_v2  ;;  %1019 = vset.pattern.permute.xlu1 %v1060_v2  ;;  %s991_s7 = sshll.u32 %s1390_s9, 3  ;;  %v340_v3 = vld [vmem:[%s1382_s2] sm:$0xff]  ;;  %v426_v30 = vld [vmem:[%s1384_s4 + $0x8] sm:$0xff] }
   0xf   : > { %345 = vperm.xlu0 %1018, %v342_v1   ;;  %s318_s14 = scalar_lea.vmem %s1380_s0, %s991_s7  ;;  %v432_v4 = vld [vmem:[%s1385_s5] sm:$0xff]  ;;  %v341_v16 = vpack.c.bf16 %v340_v3, %v340_v3  ;;  %441 = vperm.xlu1 %1019, %v433_v18   ;;  %s324_s23 = scalar_lea.vmem %s1381_s1, %s991_s7 }
  0x10   : > { %v332_v5 = vld [vmem:[%s318_s14] sm:$0xff]  ;;  %v333_v6 = vld [vmem:[%s318_s14 + $0x8] sm:$0xff]  ;;  %v334_v7 = vld [vmem:[%s318_s14 + $0x10] sm:$0xff]  ;;  %s329_s7 = scalar_lea.vmem %s1388_s8, %s1390_s9 }
  0x11   : > { %v336_v8 = vpack.c.bf16 %v332_v5, %v332_v5  ;;  %v337_v9 = vpack.c.bf16 %v333_v6, %v333_v6  ;;  %v338_v10 = vpack.c.bf16 %v334_v7, %v334_v7  ;;  %v335_v11 = vld [vmem:[%s318_s14 + $0x18] sm:$0xff]  ;;  %v841_v19 = vld [vmem:[#allocation2] sm:$0x1]  ;;  %v418_v24 = vld [vmem:[%s324_s23 + $0x8] sm:$0xff] }
  0x12   : > { %v339_v12 = vpack.c.bf16 %v335_v11, %v335_v11  ;;  %v417_v22 = vld [vmem:[%s324_s23] sm:$0xff]  ;;  %v419_v34 = vld [vmem:[%s324_s23 + $0x10] sm:$0xff]  ;;  %v420_v36 = vld [vmem:[%s324_s23 + $0x18] sm:$0xff] }
  0x13   : > { %v354_v13 = vsel %vm352_vm0, %v336_v8, 0  ;;  %v357_v14 = vsel %vm352_vm0, %v337_v9, 0  ;;  %v360_v15 = vsel %vm352_vm0, %v338_v10, 0  ;;  %v425_v29 = vld [vmem:[%s1384_s4] sm:$0xff] }
  0x14   : > { %372 = vmatpush.bf16.msra.mxu0 %v354_v13  ;;  %385 = vmatpush.bf16.msra.mxu1 %v357_v14  ;;  %v363_v17 = vsel %vm352_vm0, %v339_v12, 0  ;;  %v427_v39 = vpack.c.bf16 %v426_v30, %v425_v29 }
  0x15   : > { %398 = vmatpush.bf16.msra.mxu2 %v360_v15  ;;  %411 = vmatpush.bf16.msra.mxu3 %v363_v17 }
  0x17   : > { %436 = vperm.xlu0 %1018, %v432_v4   ;;  %995 = vmatmul.msk.bf16.vlgmr.msra.gmra.mxu0 %vm348_vm1, %v341_v16 }
  0x18   : > { %996 = vmatmul.msk.bf16.vlgmr.msra.gmra.mxu1 %vm348_vm1, %v341_v16  ;;  %997 = vmatmul.msk.bf16.vlgmr.msra.gmra.mxu2 %vm348_vm1, %v341_v16 }
  0x19   : > { %998 = vmatmul.msk.bf16.vlgmr.msra.gmra.mxu3 %vm348_vm1, %v341_v16  ;;  %844 = vperm.xlu1 %1019, %v841_v19  }
  0x81   : > { %v346_v20 = vpop.permute.xlu0 %345  ;;  %v1180_v63 = vpop.permute.xlu1 %441 }
  0x89   : > { %v1164_v52 = vpop.permute.xlu0 %436 }
  0x94   : > { %v374_v21 = vpop.f32.mrf.mxu0 }
  0x95   : > { %v387_v23 = vpop.f32.mrf.mxu1  ;;  %v375_v25 = vadd.f32 %v374_v21, %v346_v20 }
  0x96   : > { %v388_v26 = vadd.f32 %v387_v23, %v346_v20 }
  0x97   : > { %v421_v27 = vadd.f32 %v417_v22, %v375_v25 }
  0x98   : > { %v422_v28 = vadd.f32 %v418_v24, %v388_v26 }
  0x99   : > { %v428_v31 = vpack.c.bf16 %v421_v27, %v421_v27 }
  0x9a   : > { %v429_v32 = vpack.c.bf16 %v422_v28, %v422_v28 }
  0x9b   : > { %v400_v33 = vpop.f32.mrf.mxu2  ;;  %v448_v37 = vsel %vm352_vm0, %v428_v31, 0 }
  0x9c   : > { %v413_v35 = vpop.f32.mrf.mxu3  ;;  %v451_v38 = vsel %vm352_vm0, %v429_v32, 0  ;;  %v401_v40 = vadd.f32 %v400_v33, %v346_v20  ;;  %466 = vmatpush.bf16.msrb.mxu0 %v448_v37  ;;  %v376_v42 = vpop.f32.mrf.mxu0 }
  0x9d   : > { %v414_v41 = vadd.f32 %v413_v35, %v346_v20  ;;  %480 = vmatpush.bf16.msrb.mxu1 %v451_v38  ;;  %v389_v43 = vpop.f32.mrf.mxu1 }
  0x9e   : > { %v423_v44 = vadd.f32 %v419_v34, %v401_v40 }
  0x9f   : > { %v424_v45 = vadd.f32 %v420_v36, %v414_v41  ;;  %999 = vmatmul.msk.bf16.vlgmr.msrb.gmra.mxu0 %vm348_vm1, %v427_v39 }
  0xa0   : > { %1000 = vmatmul.msk.bf16.vlgmr.msrb.gmra.mxu1 %vm348_vm1, %v427_v39  ;;  %v430_v46 = vpack.c.bf16 %v423_v44, %v423_v44 }
  0xa1   : > { %v431_v47 = vpack.c.bf16 %v424_v45, %v424_v45 }
  0xa2   : > { %v454_v48 = vsel %vm352_vm0, %v430_v46, 0 }
  0xa3   : > { %v457_v49 = vsel %vm352_vm0, %v431_v47, 0  ;;  %v402_v50 = vpop.f32.mrf.mxu2  ;;  %494 = vmatpush.bf16.msrb.mxu2 %v454_v48 }
  0xa4   : > { %v415_v51 = vpop.f32.mrf.mxu3  ;;  %508 = vmatpush.bf16.msrb.mxu3 %v457_v49 }
  0xa6   : > { %1001 = vmatmul.msk.bf16.vlgmr.msrb.gmra.mxu2 %vm348_vm1, %v427_v39 }
  0xa7   : > { %1002 = vmatmul.msk.bf16.vlgmr.msrb.gmra.mxu3 %vm348_vm1, %v427_v39 }
 0x11c   : > { %v468_v53 = vpop.f32.mrf.mxu0 }
 0x11d   : > { %v482_v54 = vpop.f32.mrf.mxu1  ;;  %v1167_v55 = vadd.f32 %v468_v53, %v1164_v52 }
 0x11e   : > { %v1170_v56 = vadd.f32 %v482_v54, %v1164_v52 }
 0x11f   : > { %v1173_v57 = vmul.f32 0.70710677, %v1167_v55 }
 0x120   : > { %v1176_v58 = vmul.f32 0.70710677, %v1170_v56 }
 0x121   : > { %v531_v59 = vand.u32 2147483647, %v1173_v57 }
 0x122   : > { %v532_v60 = vand.u32 2147483647, %v1176_v58 }
 0x123   : > { %v539_v61 = vmul.f32 0.3275911, %v531_v59  ;;  %v747_v6 = vsub.f32 0.0, %v531_v59 }
 0x124   : > { %v540_v62 = vmul.f32 0.3275911, %v532_v60  ;;  %v470_v0 = vpop.f32.mrf.mxu0  ;;  %v748_v8 = vsub.f32 0.0, %v532_v60 }
 0x125   : > { %v484_v1 = vpop.f32.mrf.mxu1  ;;  %v547_v2 = vadd.f32 1.0, %v539_v61  ;;  %v1183_v4 = vadd.f32 %v470_v0, %v1180_v63  ;;  %v755_v11 = vmul.f32 %v747_v6, %v531_v59 }
 0x126   : > { %v548_v3 = vadd.f32 1.0, %v540_v62  ;;  %v1186_v5 = vadd.f32 %v484_v1, %v1180_v63  ;;  %v756_v21 = vmul.f32 %v748_v8, %v532_v60 }
 0x127   : > { %1020 = vrcp.f32 %v547_v2  ;;  %v1189_v7 = vmul.f32 0.70710677, %v1183_v4  ;;  %v564_v19 = vand.u32 2147483647, %v547_v2  ;;  %v566_v24 = vand.u32 2147483648, %v547_v2 }
 0x128   : > { %1022 = vrcp.f32 %v548_v3  ;;  %v1192_v9 = vmul.f32 0.70710677, %v1186_v5  ;;  %v763_v25 = vmul.f32 1.442695, %v755_v11  ;;  %v579_v28 = vand.u32 2147483647, %v548_v3 }
 0x129   : > { %v496_v10 = vpop.f32.mrf.mxu2  ;;  %v1195_v12 = vand.u32 2147483647, %v1189_v7  ;;  %v581_v29 = vand.u32 2147483648, %v548_v3  ;;  %v765_v34 = vmul.f32 1.442695, %v756_v21  ;;  %vm560_vm4 = vweird.f32 %v547_v2 }
 0x12a   : > { %v1198_v14 = vand.u32 2147483647, %v1192_v9  ;;  %v1202_v18 = vadd.f32 %v496_v10, %v1164_v52  ;;  %vm575_vm5 = vweird.f32 %v548_v3  ;;  %v510_v36 = vpop.f32.mrf.mxu3  ;;  %vm565_vm7 = vcmp.eq.f32.partialorder %v564_v19, 8.507059e+37 }
 0x12b   : > { %v543_v17 = vmul.f32 0.3275911, %v1195_v12  ;;  %v567_v37 = vor.u32 1.1754944e-38, %v566_v24  ;;  %vm580_vm9 = vcmp.eq.f32.partialorder %v579_v28, 8.507059e+37  ;;  %v582_v40 = vor.u32 1.1754944e-38, %v581_v29 }
 0x12c   : > { %v544_v22 = vmul.f32 0.3275911, %v1198_v14  ;;  %v1211_v32 = vmul.f32 0.70710677, %v1202_v18  ;;  %v1220_v44 = vadd.f32 %v510_v36, %v1164_v52  ;;  %v751_v48 = vsub.f32 0.0, %v1195_v12 }
 0x12d   : > { %v1021_v13 = vpop.eup %1020  ;;  %v1205_v26 = vadd.f32 1.0, %v543_v17  ;;  %v752_v54 = vsub.f32 0.0, %v1198_v14 }
 0x12e   : > { %v1023_v15 = vpop.eup %1022  ;;  %v556_v16 = vmul.f32 %v1021_v13, %v547_v2  ;;  %v1207_v30 = vadd.f32 1.0, %v544_v22  ;;  %vm561_vm2 = vweird.f32 %v1021_v13  ;;  %v1215_v41 = vand.u32 2147483647, %v1211_v32 }
 0x12f   : > { %v571_v20 = vmul.f32 %v1023_v15, %v548_v3  ;;  %1024 = vrcp.f32 %v1205_v26  ;;  %vm576_vm3 = vweird.f32 %v1023_v15  ;;  %vm562_vm6 = vmor %vm560_vm4, %vm561_vm2  ;;  %vm620_vm10 = vweird.f32 %v1205_v26 }
 0x130   : > { %v557_v23 = vsub.f32 1.0, %v556_v16  ;;  %1026 = vrcp.f32 %v1207_v30  ;;  %vm577_vm8 = vmor %vm575_vm5, %vm576_vm3  ;;  %v541_v49 = vmul.f32 0.3275911, %v1215_v41  ;;  %v624_v59 = vand.u32 2147483647, %v1205_v26 }
 0x131   : > { %v572_v27 = vsub.f32 1.0, %v571_v20  ;;  %1028 = vpow2.f32 %v763_v25  ;;  %v626_v2 = vand.u32 2147483648, %v1205_v26  ;;  %vm635_vm11 = vweird.f32 %v1207_v30 }
 0x132   : > { %v558_v31 = vmul.f32 %v1021_v13, %v557_v23  ;;  %1030 = vpow2.f32 %v765_v34  ;;  %v1233_v61 = vadd.f32 1.0, %v541_v49  ;;  %v639_v8 = vand.u32 2147483647, %v1207_v30 }
 0x133   : > { %v573_v33 = vmul.f32 %v1023_v15, %v572_v27  ;;  %v1247_v19 = vmul.f32 0.70710677, %v1220_v44  ;;  %vm625_vm14 = vcmp.eq.f32.partialorder %v624_v59, 8.507059e+37  ;;  %v759_v22 = vmul.f32 %v751_v48, %v1195_v12 }
 0x134   : > { %v559_v35 = vadd.f32 %v1021_v13, %v558_v31  ;;  %1032 = vrcp.f32 %v1233_v61  ;;  %v627_v24 = vor.u32 1.1754944e-38, %v626_v2  ;;  %vm640_vm1 = vcmp.eq.f32.partialorder %v639_v8, 8.507059e+37 }
 0x135   : > { %v574_v38 = vadd.f32 %v1023_v15, %v573_v33  ;;  %v1025_v45 = vpop.eup %1024  ;;  %v1254_v27 = vand.u32 2147483647, %v1247_v19  ;;  %vm590_vm3 = vweird.f32 %v1233_v61 }
 0x136   : > { %v563_v39 = vsel %vm562_vm6, %v1021_v13, %v559_v35  ;;  %v1027_v50 = vpop.eup %1026  ;;  %v616_v53 = vmul.f32 %v1025_v45, %v1205_v26  ;;  %vm621_vm12 = vweird.f32 %v1025_v45 }
 0x137   : > { %v1217_v42 = vsel %vm565_vm7, %v567_v37, %v563_v39  ;;  %v578_v43 = vsel %vm577_vm8, %v1023_v15, %v574_v38  ;;  %v631_v60 = vmul.f32 %v1027_v50, %v1207_v30  ;;  %v1235_v62 = vpop.eup %1028  ;;  %v641_v15 = vand.u32 2147483648, %v1207_v30  ;;  %vm622_vm15 = vmor %vm620_vm10, %vm621_vm12 }
 0x138   : > { %v675_v46 = vmul.f32 1.0614054, %v1217_v42  ;;  %v1223_v47 = vsel %vm580_vm9, %v582_v40, %v578_v43  ;;  %v617_v1 = vsub.f32 1.0, %v616_v53  ;;  %v1242_v10 = vpop.eup %1030  ;;  %vm636_vm13 = vweird.f32 %v1027_v50 }
 0x139   : > { %v676_v51 = vmul.f32 1.0614054, %v1223_v47  ;;  %v632_v6 = vsub.f32 1.0, %v631_v60  ;;  %vm637_vm0 = vmor %vm635_vm11, %vm636_vm13  ;;  %v642_v31 = vor.u32 1.1754944e-38, %v641_v15  ;;  %v542_v26 = vmul.f32 0.3275911, %v1254_v27 }
 0x13a   : > { %v683_v52 = vadd.f32 -1.4531521, %v675_v46  ;;  %v618_v13 = vmul.f32 %v1025_v45, %v617_v1  ;;  %v1033_v33 = vpop.eup %1032  ;;  %v760_v43 = vmul.f32 %v752_v54, %v1198_v14  ;;  %v498_v14 = vpop.f32.mrf.mxu2  ;;  %v771_v1 = vmul.f32 1.442695, %v759_v22 }
 0x13b   : > { %v684_v0 = vadd.f32 -1.4531521, %v676_v51  ;;  %v633_v17 = vmul.f32 %v1027_v50, %v632_v6  ;;  %v586_v39 = vmul.f32 %v1033_v33, %v1233_v61  ;;  %vm591_vm2 = vweird.f32 %v1033_v33 }
 0x13c   : > { %v691_v3 = vmul.f32 %v683_v52, %v1217_v42  ;;  %v619_v21 = vadd.f32 %v1025_v45, %v618_v13  ;;  %v596_v52 = vand.u32 2147483648, %v1233_v61  ;;  %v773_v13 = vmul.f32 1.442695, %v760_v43  ;;  %vm592_vm4 = vmor %vm590_vm3, %vm591_vm2 }
 0x13d   : > { %v692_v11 = vmul.f32 %v684_v0, %v1223_v47  ;;  %v634_v25 = vadd.f32 %v1027_v50, %v633_v17  ;;  %v587_v49 = vsub.f32 1.0, %v586_v39  ;;  %vm795_vm7 = vcmp.ge.f32.partialorder %v1173_v57, 0.0 }
 0x13e   : > { %v699_v16 = vadd.f32 1.4214138, %v691_v3  ;;  %v623_v29 = vsel %vm622_vm15, %v1025_v45, %v619_v21  ;;  %v1269_v45 = vadd.f32 1.0, %v542_v26  ;;  %v597_v15 = vor.u32 1.1754944e-38, %v596_v52 }
 0x13f   : > { %v700_v20 = vadd.f32 1.4214138, %v692_v11  ;;  %v1259_v34 = vsel %vm625_vm14, %v627_v24, %v623_v29  ;;  %v638_v35 = vsel %vm637_vm0, %v1027_v50, %v634_v25  ;;  %v594_v50 = vand.u32 2147483647, %v1233_v61 }
 0x140   : > { %v707_v23 = vmul.f32 %v699_v16, %v1217_v42  ;;  %v679_v37 = vmul.f32 1.0614054, %v1259_v34  ;;  %v1263_v38 = vsel %vm640_vm1, %v642_v31, %v638_v35  ;;  %1034 = vrcp.f32 %v1269_v45 }
 0x141   : > { %v708_v28 = vmul.f32 %v700_v20, %v1223_v47  ;;  %v680_v30 = vmul.f32 1.0614054, %v1263_v38  ;;  %v588_v0 = vmul.f32 %v1033_v33, %v587_v49  ;;  %v1281_v16 = vadd.f32 %v498_v14, %v1180_v63 }
 0x142   : > { %v715_v12 = vadd.f32 -0.28449672, %v707_v23  ;;  %v687_v48 = vadd.f32 -1.4531521, %v679_v37  ;;  %vm595_vm5 = vcmp.eq.f32.partialorder %v594_v50, 8.507059e+37  ;;  %1036 = vpow2.f32 %v771_v1 }
 0x143   : > { %v716_v36 = vadd.f32 -0.28449672, %v708_v28  ;;  %v688_v53 = vadd.f32 -1.4531521, %v680_v30  ;;  %v589_v8 = vadd.f32 %v1033_v33, %v588_v0  ;;  %1038 = vpow2.f32 %v773_v13  ;;  %v512_v0 = vpop.f32.mrf.mxu3 }
 0x144   : > { %v723_v40 = vmul.f32 %v715_v12, %v1217_v42  ;;  %v695_v60 = vmul.f32 %v687_v48, %v1259_v34  ;;  %v609_v37 = vand.u32 2147483647, %v1269_v45  ;;  %v611_v39 = vand.u32 2147483648, %v1269_v45 }
 0x145   : > { %v724_v46 = vmul.f32 %v716_v36, %v1223_v47  ;;  %v696_v2 = vmul.f32 %v688_v53, %v1263_v38  ;;  %v593_v20 = vsel %vm592_vm4, %v1033_v33, %v589_v8  ;;  %vm605_vm8 = vweird.f32 %v1269_v45 }
 0x146   : > { %v731_v51 = vadd.f32 0.2548296, %v723_v40  ;;  %v703_v6 = vadd.f32 1.4214138, %v695_v60  ;;  %v1035_v21 = vpop.eup %1034  ;;  %v1287_v23 = vsel %vm595_vm5, %v597_v15, %v593_v20  ;;  %vm796_vm9 = vcmp.ge.f32.partialorder %v1176_v58, 0.0 }
 0x147   : > { %v732_v59 = vadd.f32 0.2548296, %v724_v46  ;;  %v704_v11 = vadd.f32 1.4214138, %v696_v2  ;;  %v677_v24 = vmul.f32 1.0614054, %v1287_v23  ;;  %v601_v25 = vmul.f32 %v1035_v21, %v1269_v45 }
 0x148   : > { %v739_v54 = vmul.f32 %v731_v51, %v1217_v42  ;;  %v711_v42 = vmul.f32 %v703_v6, %v1259_v34  ;;  %vm606_vm6 = vweird.f32 %v1035_v21  ;;  %v1037_v48 = vpop.eup %1036  ;;  %vm610_vm11 = vcmp.eq.f32.partialorder %v609_v37, 8.507059e+37 }
 0x149   : > { %v740_v3 = vmul.f32 %v732_v59, %v1223_v47  ;;  %v712_v22 = vmul.f32 %v704_v11, %v1263_v38  ;;  %v685_v33 = vadd.f32 -1.4531521, %v677_v24  ;;  %v1039_v51 = vpop.eup %1038  ;;  %vm607_vm10 = vmor %vm605_vm8, %vm606_vm6  ;;  %v1317_v6 = vadd.f32 %v512_v0, %v1180_v63 }
 0x14a   : > { %v779_v17 = vmul.f32 %v1235_v62, %v739_v54  ;;  %v719_v61 = vadd.f32 -0.28449672, %v711_v42  ;;  %v1292_v62 = vmul.f32 0.70710677, %v1281_v16  ;;  %v612_v54 = vor.u32 1.1754944e-38, %v611_v39 }
 0x14b   : > { %v780_v47 = vmul.f32 %v1242_v10, %v740_v3  ;;  %v720_v28 = vadd.f32 -0.28449672, %v712_v22  ;;  %v602_v10 = vsub.f32 1.0, %v601_v25  ;;  %v693_v30 = vmul.f32 %v685_v33, %v1287_v23 }
 0x14c   : > { %v787_v29 = vsub.f32 1.0, %v779_v17  ;;  %v727_v31 = vmul.f32 %v719_v61, %v1259_v34  ;;  %v1297_v26 = vand.u32 2147483647, %v1292_v62  ;;  %v515_v11 = vmul.f32 0.5, %v1167_v55 }
 0x14d   : > { %v788_v12 = vsub.f32 1.0, %v780_v47  ;;  %v728_v35 = vmul.f32 %v720_v28, %v1263_v38  ;;  %v603_v43 = vmul.f32 %v1035_v21, %v602_v10  ;;  %v701_v2 = vadd.f32 1.4214138, %v693_v30 }
 0x14e   : > { %v735_v36 = vadd.f32 0.2548296, %v727_v31  ;;  %v545_v46 = vmul.f32 0.3275911, %v1297_v26  ;;  %v803_v49 = vsub.f32 0.0, %v787_v29  ;;  %vm799_vm12 = vcmp.ge.f32.partialorder %v1189_v7, 0.0 }
 0x14f   : > { %v736_v40 = vadd.f32 0.2548296, %v728_v35  ;;  %v804_v53 = vsub.f32 0.0, %v788_v12  ;;  %v604_v59 = vadd.f32 %v1035_v21, %v603_v43  ;;  %vm800_vm13 = vcmp.ge.f32.partialorder %v1192_v9, 0.0 }
 0x150   : > { %v743_v50 = vmul.f32 %v735_v36, %v1259_v34  ;;  %v1307_v60 = vadd.f32 1.0, %v545_v46  ;;  %v811_v45 = vsel %vm795_vm7, %v787_v29, %v803_v49  ;;  %v709_v42 = vmul.f32 %v701_v2, %v1287_v23 }
 0x151   : > { %v744_v52 = vmul.f32 %v736_v40, %v1263_v38  ;;  %v608_v34 = vsel %vm607_vm10, %v1035_v21, %v604_v59  ;;  %v812_v58 = vsel %vm796_vm9, %v788_v12, %v804_v53  ;;  %v819_v17 = vadd.f32 1.0, %v811_v45 }
 0x152   : > { %v783_v14 = vmul.f32 %v1037_v48, %v743_v50  ;;  %1040 = vrcp.f32 %v1307_v60  ;;  %v1314_v3 = vsel %vm610_vm11, %v612_v54, %v608_v34  ;;  %v820_v20 = vadd.f32 1.0, %v812_v58 }
 0x153   : > { %v784_v1 = vmul.f32 %v1039_v51, %v744_v52  ;;  %v678_v15 = vmul.f32 1.0614054, %v1314_v3  ;;  %v749_v63 = vsub.f32 0.0, %v1215_v41  ;;  %v1326_v47 = vmul.f32 0.70710677, %v1317_v6 }
 0x154   : > { %v791_v38 = vsub.f32 1.0, %v783_v14  ;;  %v516_v55 = vmul.f32 0.5, %v1170_v56  ;;  %v519_v7 = vmul.f32 0.5, %v1183_v4  ;;  %v520_v25 = vmul.f32 0.5, %v1186_v5 }
 0x155   : > { %v792_v8 = vsub.f32 1.0, %v784_v1  ;;  %v686_v28 = vadd.f32 -1.4531521, %v678_v15  ;;  %v827_v31 = vmul.f32 %v819_v17, %v515_v11  ;;  %v717_v10 = vadd.f32 -0.28449672, %v709_v42 }
 0x156   : > { %v807_v13 = vsub.f32 0.0, %v791_v38  ;;  %v1333_v12 = vand.u32 2147483647, %v1326_v47  ;;  %v828_v35 = vmul.f32 %v820_v20, %v516_v55  ;;  %v757_v56 = vmul.f32 %v749_v63, %v1215_v41 }
 0x157   : > { %v808_v57 = vsub.f32 0.0, %v792_v8  ;;  %v654_v39 = vand.u32 2147483647, %v1307_v60  ;;  %v656_v5 = vand.u32 2147483648, %v1307_v60  ;;  %v694_v43 = vmul.f32 %v686_v28, %v1314_v3 }
 0x158   : > { %v815_v21 = vsel %vm799_vm12, %v791_v38, %v807_v13  ;;  %v1041_v22 = vpop.eup %1040  ;;  %v546_v40 = vmul.f32 0.3275911, %v1333_v12  ;;  %v725_v48 = vmul.f32 %v717_v10, %v1287_v23  ;;  %v767_v50 = vmul.f32 1.442695, %v757_v56 }
 0x159   : > { %v823_v61 = vadd.f32 1.0, %v815_v21  ;;  %v816_v24 = vsel %vm800_vm13, %v792_v8, %v808_v57  ;;  %v646_v29 = vmul.f32 %v1041_v22, %v1307_v60  ;;  %vm651_vm14 = vweird.f32 %v1041_v22 }
 0x15a   : > { %v824_v9 = vadd.f32 1.0, %v816_v24  ;;  %v554_v49 = vadd.f32 1.0, %v546_v40  ;;  %vm650_vm15 = vweird.f32 %v1307_v60  ;;  %v657_v41 = vor.u32 1.1754944e-38, %v656_v5  ;;  %v835_v60 = vld [vmem:[%s1386_s6] sm:$0x1] }
 0x15b   : > { %v831_v33 = vmul.f32 %v823_v61, %v519_v7  ;;  %v647_v37 = vsub.f32 1.0, %v646_v29  ;;  %vm652_vm0 = vmor %vm650_vm15, %vm651_vm14  ;;  %v702_v53 = vadd.f32 1.4214138, %v694_v43  ;;  %vm655_vm1 = vcmp.eq.f32.partialorder %v654_v39, 8.507059e+37 }
 0x15c   : > { %v832_v36 = vmul.f32 %v824_v9, %v520_v25  ;;  %1042 = vrcp.f32 %v554_v49  ;;  %v733_v59 = vadd.f32 0.2548296, %v725_v48  ;;  %v753_v14 = vsub.f32 0.0, %v1297_v26 }
 0x15d   : > { %v837_v4 = vpack.c.bf16 %v831_v33, %v827_v31  ;;  %v648_v46 = vmul.f32 %v1041_v22, %v647_v37  ;;  %1044 = vpow2.f32 %v767_v50  ;;  %v710_v1 = vmul.f32 %v702_v53, %v1314_v3 }
 0x15e   : > { %v838_v30 = vpack.c.bf16 %v832_v36, %v828_v35  ;;  %v741_v45 = vmul.f32 %v733_v59, %v1287_v23  ;;  %v750_v38 = vsub.f32 0.0, %v1254_v27  ;;  %v761_v58 = vmul.f32 %v753_v14, %v1297_v26 }
 0x15f   : > { %859 = vmatpush.bf16.msra.mxu0 %v837_v4  ;;  %v649_v51 = vadd.f32 %v1041_v22, %v648_v46  ;;  %v1350_v8 = vpack.c.bf16 %v835_v60, %v835_v60  ;;  %vm848_vm2 = vcmask 130048   ;;  %v718_v17 = vadd.f32 -0.28449672, %v710_v1 }
 0x160   : > { %872 = vmatpush.bf16.msra.mxu1 %v838_v30  ;;  %v758_v20 = vmul.f32 %v750_v38, %v1254_v27  ;;  %v775_v21 = vmul.f32 1.442695, %v761_v58  ;;  %v671_v26 = vand.u32 2147483648, %v554_v49  ;;  %v669_v55 = vand.u32 2147483647, %v554_v49 }
 0x161   : > { %v653_v52 = vsel %vm652_vm0, %v1041_v22, %v649_v51  ;;  %v726_v7 = vmul.f32 %v718_v17, %v1314_v3  ;;  %vm665_vm4 = vweird.f32 %v554_v49  ;;  %v754_v33 = vsub.f32 0.0, %v1333_v12 }
 0x162   : > { %v658_v0 = vsel %vm655_vm1, %v657_v41, %v653_v52  ;;  %v1043_v34 = vpop.eup %1042  ;;  %1003 = vmatmul.msk.bf16.vlgmr.msra.gmra.mxu0 %vm848_vm2, %v1350_v8  ;;  %v769_v25 = vmul.f32 1.442695, %v758_v20  ;;  %1046 = vpow2.f32 %v775_v21  ;;  %v672_v9 = vor.u32 1.1754944e-38, %v671_v26 }
 0x163   : > { %v681_v54 = vmul.f32 1.0614054, %v658_v0  ;;  %v661_v13 = vmul.f32 %v1043_v34, %v554_v49  ;;  %1004 = vmatmul.msk.bf16.vlgmr.msra.gmra.mxu1 %vm848_vm2, %v1350_v8  ;;  %v1045_v15 = vpop.eup %1044  ;;  %vm666_vm3 = vweird.f32 %v1043_v34  ;;  %vm670_vm6 = vcmp.eq.f32.partialorder %v669_v55, 8.507059e+37 }
 0x164   : > { %v781_v23 = vmul.f32 %v1045_v15, %v741_v45  ;;  %vm667_vm5 = vmor %vm665_vm4, %vm666_vm3  ;;  %v734_v10 = vadd.f32 0.2548296, %v726_v7  ;;  %1048 = vpow2.f32 %v769_v25  ;;  %v762_v5 = vmul.f32 %v754_v33, %v1333_v12 }
 0x165   : > { %v689_v2 = vadd.f32 -1.4531521, %v681_v54  ;;  %v662_v42 = vsub.f32 1.0, %v661_v13  ;;  %vm797_vm7 = vcmp.ge.f32.partialorder %v1211_v32, 0.0  ;;  %vm801_vm8 = vcmp.ge.f32.partialorder %v1292_v62, 0.0 }
 0x166   : > { %v789_v28 = vsub.f32 1.0, %v781_v23  ;;  %v742_v40 = vmul.f32 %v734_v10, %v1314_v3  ;;  %v777_v51 = vmul.f32 1.442695, %v762_v5  ;;  %v517_v12 = vmul.f32 0.5, %v1202_v18 }
 0x167   : > { %v697_v11 = vmul.f32 %v689_v2, %v658_v0  ;;  %v663_v22 = vmul.f32 %v1043_v34, %v662_v42  ;;  %v521_v3 = vmul.f32 0.5, %v1281_v16  ;;  %vm798_vm9 = vcmp.ge.f32.partialorder %v1247_v19, 0.0 }
 0x168   : > { %v805_v56 = vsub.f32 0.0, %v789_v28  ;;  %v1047_v39 = vpop.eup %1046  ;;  %1050 = vpow2.f32 %v777_v51  ;;  %vm802_vm10 = vcmp.ge.f32.partialorder %v1326_v47, 0.0  ;;  %v522_v42 = vmul.f32 0.5, %v1317_v6  ;;  %v845_v47 = vpop.permute.xlu1 %844 }
 0x169   : > { %v705_v57 = vadd.f32 1.4214138, %v697_v11  ;;  %v664_v24 = vadd.f32 %v1043_v34, %v663_v22  ;;  %vm911_vm11 = vcmask 1040384   ;;  %vm913_vm12 = vcmask 1042434  }
 0x16a   : > { %v813_v46 = vsel %vm797_vm7, %v789_v28, %v805_v56  ;;  %v1049_v50 = vpop.eup %1048  ;;  %vm915_vm13 = vcmask 1041408  }
 0x16b   : > { %v713_v63 = vmul.f32 %v705_v57, %v658_v0  ;;  %v668_v31 = vsel %vm667_vm5, %v1043_v34, %v664_v24  ;;  %v782_v41 = vmul.f32 %v1049_v50, %v742_v40  ;;  %v821_v59 = vadd.f32 1.0, %v813_v46 }
 0x16c   : > { %v673_v27 = vsel %vm670_vm6, %v672_v9, %v668_v31  ;;  %v518_v57 = vmul.f32 0.5, %v1220_v44  ;;  %v847_v24 = vperm.slane %v845_v47, 0  ;;  %v918_v9 = vlaneseq }
 0x16d   : > { %v721_v61 = vadd.f32 -0.28449672, %v713_v63  ;;  %v682_v36 = vmul.f32 1.0614054, %v673_v27  ;;  %v790_v32 = vsub.f32 1.0, %v782_v41  ;;  %v829_v2 = vmul.f32 %v821_v59, %v517_v12 }
 0x16e   : > { %v1051_v11 = vpop.eup %1050  ;;  %vm920_vm14 = vcmp.lt.s32.totalorder %v918_v9, 512 }
 0x16f   : > { %v729_v29 = vmul.f32 %v721_v61, %v658_v0  ;;  %v690_v4 = vadd.f32 -1.4531521, %v682_v36  ;;  %v806_v38 = vsub.f32 0.0, %v790_v32 }
 0x171   : > { %v737_v35 = vadd.f32 0.2548296, %v729_v29  ;;  %v698_v43 = vmul.f32 %v690_v4, %v673_v27  ;;  %v814_v62 = vsel %vm798_vm9, %v790_v32, %v806_v38 }
 0x172   : > { %v822_v16 = vadd.f32 1.0, %v814_v62 }
 0x173   : > { %v745_v37 = vmul.f32 %v737_v35, %v658_v0  ;;  %v706_v49 = vadd.f32 1.4214138, %v698_v43 }
 0x174   : > { %v830_v20 = vmul.f32 %v822_v16, %v518_v57 }
 0x175   : > { %v785_v30 = vmul.f32 %v1047_v39, %v745_v37  ;;  %v714_v52 = vmul.f32 %v706_v49, %v673_v27 }
 0x177   : > { %v793_v48 = vsub.f32 1.0, %v785_v30  ;;  %v722_v14 = vadd.f32 -0.28449672, %v714_v52 }
 0x179   : > { %v809_v53 = vsub.f32 0.0, %v793_v48  ;;  %v730_v1 = vmul.f32 %v722_v14, %v673_v27 }
 0x17b   : > { %v817_v0 = vsel %vm801_vm8, %v793_v48, %v809_v53  ;;  %v738_v34 = vadd.f32 0.2548296, %v730_v1 }
 0x17c   : > { %v825_v54 = vadd.f32 1.0, %v817_v0 }
 0x17d   : > { %v746_v58 = vmul.f32 %v738_v34, %v673_v27 }
 0x17e   : > { %v833_v60 = vmul.f32 %v825_v54, %v521_v3 }
 0x17f   : > { %v786_v13 = vmul.f32 %v1051_v11, %v746_v58 }
 0x180   : > { %v839_v45 = vpack.c.bf16 %v833_v60, %v829_v2 }
 0x181   : > { %v794_v15 = vsub.f32 1.0, %v786_v13 }
 0x182   : > { %885 = vmatpush.bf16.msra.mxu2 %v839_v45 }
 0x183   : > { %v810_v18 = vsub.f32 0.0, %v794_v15 }
 0x185   : > { %1005 = vmatmul.msk.bf16.vlgmr.msra.gmra.mxu2 %vm848_vm2, %v1350_v8  ;;  %v818_v17 = vsel %vm802_vm10, %v794_v15, %v810_v18 }
 0x186   : > { %v826_v23 = vadd.f32 1.0, %v818_v17 }
 0x188   : > { %v834_v21 = vmul.f32 %v826_v23, %v522_v42 }
 0x18a   : > { %v840_v26 = vpack.c.bf16 %v834_v21, %v830_v20 }
 0x18c   : > { %898 = vmatpush.bf16.msra.mxu3 %v840_v26 }
 0x18f   : > { %1006 = vmatmul.msk.bf16.vlgmr.msra.gmra.mxu3 %vm848_vm2, %v1350_v8 }
 0x1df   : > { %v861_v19 = vpop.f32.mrf.mxu0 }
 0x1e0   : > { %v874_v63 = vpop.f32.mrf.mxu1  ;;  %v862_v27 = vadd.f32 %v861_v19, %v847_v24 }
 0x1e1   : > { %v875_v44 = vadd.f32 %v874_v63, %v847_v24 }
 0x1e3   : > { %v908_v28 = vrot.slane %v875_v44, 7 }
 0x1e5   : > { %v912_v33 = vsel %vm911_vm11, %v862_v27, %v908_v28 }
 0x1e7   : > { %v863_v22 = vpop.f32.mrf.mxu0 }
 0x1e8   : > { %v876_v55 = vpop.f32.mrf.mxu1 }
 0x208   : > { %v887_v7 = vpop.f32.mrf.mxu2 }
 0x209   : > { %v888_v25 = vadd.f32 %v887_v7, %v847_v24 }
 0x20b   : > { %v909_v29 = vrot.slane %v888_v25, 6 }
 0x210   : > { %v889_v61 = vpop.f32.mrf.mxu2 }
 0x212   : > { %v900_v6 = vpop.f32.mrf.mxu3 }
 0x213   : > { %v901_v31 = vadd.f32 %v900_v6, %v847_v24 }
 0x215   : > { %v910_v8 = vrot.slane %v901_v31, 5 }
 0x217   : > { %v914_v10 = vsel %vm913_vm12, %v909_v29, %v910_v8 }
 0x218   : > { %v916_v35 = vsel %vm915_vm13, %v912_v33, %v914_v10 }
 0x219   : > { %922 = vst.msk [vmem:[%s329_s7] sm:$0xf] %vm920_vm14, %v916_v35 }
 0x21a   : > { %v902_v36 = vpop.f32.mrf.mxu3 }
 0x21b PF: > { %s20_s29 = sadd.s32 1, %s1058_s29  }
 0x21c   : > { %p17_p4 = scmp.ge.s32.totalorder %s20_s29, 4  }
 0x21e   :  { %19 = sbr.rel (!%p17_p4) target bundleno = 3 (0x3), region = 85 }

</bundles_post_ra>
